<compile_context>
chip_gen: v7x
topology: tpu7x:2x2x1
jax: 0.10.0
libtpu: 0.0.40
codegen_flags: <defaults>
</compile_context>

<pallas_src>
import functools

import jax
import jax.numpy as jnp
from jax import lax
from jax.experimental import pallas as pl
from jax.experimental.pallas import tpu as pltpu


def _round_up(x, m):
    return -(-x // m) * m


# --------------------------------------------------------------------------- #
# Kernel
# --------------------------------------------------------------------------- #
def pool_time_kernel(feat_ref, wq_ref, bq_ref, wk_ref, bk_ref, wo_ref, bo_ref,
                     out_ref, *, valid_seqlen):
    bb, s_pad, d = feat_ref.shape
    h = wq_ref.shape[0]

    # (bb, s_pad, d) -> (bb*s_pad, d).  Layout-free: the wrapper pads seqlen to
    # a multiple of 8 sublanes, so the collapse never crosses an (8,128) tile.
    x = feat_ref[...].reshape(bb * s_pad, d)

    # q / k projections.  PyTorch Linear weights are (out, in), so contract the
    # feature dim of BOTH operands (no .T -> no per-step relayout of the
    # grid-invariant weights).  Two separate matmuls avoid slicing a fused
    # (.., 2H) result mid-lane-tile; fusing only pays off when H % 128 == 0.
    dn = (((1,), (1,)), ((), ()))
    q = lax.dot_general(x, wq_ref[...], dn,
                        preferred_element_type=jnp.float32) + bq_ref[...]
    k = lax.dot_general(x, wk_ref[...], dn,
                        preferred_element_type=jnp.float32) + bk_ref[...]
    q = q.reshape(bb, s_pad, h)
    k = k.reshape(bb, s_pad, h)

    if s_pad != valid_seqlen:
        # Padded time steps have zero features but would still carry the bias
        # through q/k; zeroing q removes their contribution to the contraction.
        t = lax.broadcasted_iota(jnp.int32, (bb, s_pad, h), 1)
        q = jnp.where(t < valid_seqlen, q, 0.0)

    # dots[b] = q[b]^T @ k[b]  (contract the time dim), f32 accumulation.
    # TODO(synk): if the MXU-push slot ever binds at very large batch blocks,
    # pack several batch items along the 128/256 MXU lanes and extract the
    # block-diagonal instead of one tiny matmul per item.
    dots = jnp.einsum("bsh,bsg->bhg", q, k, preferred_element_type=jnp.float32)
    dots_flat = dots.reshape(bb, h * h)

    # Output projection.  Wo stays f32 even in the bf16-operand path (it is
    # grid-invariant, DMA'd once) -- no per-step upcast.  Contraction over H*H,
    # no transpose; Wo rows are zero-padded so the store is lane-dense.
    out = lax.dot_general(dots_flat, wo_ref[...], dn,
                          preferred_element_type=jnp.float32) + bo_ref[...]
    out_ref[...] = out.astype(out_ref.dtype)


# --------------------------------------------------------------------------- #
# Block-size selection
# --------------------------------------------------------------------------- #
def _choose_block_bs(bs, fits, min_blocks):
    # (a) largest candidate (multiple of 8, or the whole batch) under the VMEM
    #     estimate.
    cands = sorted({bs} | {8 * i for i in range(1, bs // 8 + 1)}, reverse=True)
    cap = next((b for b in cands if fits(b)), min(8, bs))
    # (b) dual-TC chips: leave at least `min_blocks` grid steps so every core
    #     gets work under dimension_semantics=("parallel",).
    if min_blocks > 1:
        cap = min(cap, max(1, -(-bs // min_blocks)))
    # (c) prefer a block that divides bs exactly (no batch padding -> no extra
    #     HBM round trip of feat).  Valid blocks are multiples of 8 (sublane-
    #     dense output stores / (8,128) BlockSpec rule) or the full batch.
    passes = (True, False) if min_blocks > 1 else (False,)
    for prefer_even in passes:
        for b in range(cap, 0, -1):
            if bs % b or (b % 8 and b != bs):
                continue
            if prefer_even and (bs // b) % 2:
                continue
            if 2 * b >= cap:
                return b
            break  # divisors only get smaller; try the next pass
    # (d) no suitable divisor: fall back to a multiple-of-8 block and pad.
    return max(8, cap // 8 * 8)


# --------------------------------------------------------------------------- #
# Wrapper
# --------------------------------------------------------------------------- #
def pool_time_dimension(feat, wq, bq, wk, bk, wo, bo, *,
                        compute_dtype=None, block_bs=None):
    """feat: (bs, seqlen, dim).  Weights use the PyTorch nn.Linear convention
    W: (out_features, in_features), i.e. y = x @ W.T + b.

    compute_dtype: optional operand dtype (e.g. jnp.bfloat16) for feat/Wq/Wk.
    bf16 operands are native on the v5e, v6e and v7x MXU; accumulation, biases
    and the output projection stay f32."""
    bs, seqlen, dim = feat.shape
    hidden = wq.shape[0]
    out_dtype = feat.dtype

    # ---- one-time layout padding (wrapper side) ---------------------------
    s_pad = max(8, _round_up(seqlen, 8))
    if s_pad != seqlen:
        feat = jnp.pad(feat, ((0, 0), (0, s_pad - seqlen), (0, 0)))

    # Pad the output feature dim to a multiple of 128 lanes so every output
    # store is an unmasked, lane-dense vst (dim=32 would otherwise hit masked
    # partial stores).  Extra Wo rows / bo entries are zeros, sliced off below.
    dim_pad = _round_up(dim, 128)
    wo_p = wo.astype(jnp.float32)
    bo_p = bo.astype(jnp.float32)
    if dim_pad != dim:
        wo_p = jnp.pad(wo_p, ((0, dim_pad - dim), (0, 0)))
        bo_p = jnp.pad(bo_p, (0, dim_pad - dim))
    bo_p = bo_p.reshape(1, dim_pad)
    bq_p = bq.astype(jnp.float32).reshape(1, hidden)
    bk_p = bk.astype(jnp.float32).reshape(1, hidden)

    if compute_dtype is not None:
        feat = feat.astype(compute_dtype)
        wq = wq.astype(compute_dtype)
        wk = wk.astype(compute_dtype)

    # ---- generation-aware VMEM budget --------------------------------------
    try:
        vmem_cap = int(pltpu.get_tpu_info().vmem_capacity_bytes)
    except Exception:
        vmem_cap = 64 * 2 ** 20          # v7x per-core size: safe lower bound
    budget = int(0.85 * vmem_cap)        # headroom for compiler scratch

    try:
        kind = jax.devices()[0].device_kind.lower()
    except Exception:
        kind = ""
    # Chips with 2 TensorCores sharing a "parallel" grid axis want >= 2 blocks;
    # single-TC chips (v5e/v6e) prefer one maximal block (fewer grid steps).
    min_blocks = min(bs, 2 if any(t in kind for t in ("v7", "v4", "v3")) else 1)

    in_item = jnp.dtype(feat.dtype).itemsize
    w_item = jnp.dtype(wq.dtype).itemsize
    out_item = jnp.dtype(out_dtype).itemsize
    lane = lambda c: _round_up(c, 128)
    sub = lambda r: _round_up(r, 8)

    def est_vmem(b):
        """VMEM bytes for one grid step, incl. (8,128) lane/sublane padding and
        the in-kernel f32 intermediates."""
        feat_blk = 2 * b * s_pad * lane(dim) * in_item           # double-buffered
        out_blk = 2 * sub(b) * lane(dim_pad) * out_item          # double-buffered
        weights = (2 * sub(hidden) * lane(dim) * w_item          # Wq, Wk
                   + 2 * 8 * lane(hidden) * 4                    # bq, bk (f32)
                   + sub(dim_pad) * lane(hidden * hidden) * 4    # Wo (f32)
                   + 8 * lane(dim_pad) * 4)                      # bo (f32)
        inter = (b * s_pad * lane(dim) * 4                       # x (worst case copy)
                 + 2 * b * s_pad * lane(hidden) * 4              # q, k
                 + b * sub(hidden) * lane(hidden) * 4            # dots
                 + sub(b) * lane(hidden * hidden) * 4            # dots flattened
                 + sub(b) * lane(dim_pad) * 4)                   # out (pre-store)
        return feat_blk + out_blk + weights + inter

    if block_bs is None:
        block_bs = _choose_block_bs(bs, lambda b: est_vmem(b) <= budget,
                                    min_blocks)
    else:
        block_bs = max(1, min(bs, int(block_bs)))
        if block_bs < bs and block_bs % 8:
            block_bs = _round_up(block_bs, 8)

    n_blocks = pl.cdiv(bs, block_bs)
    padded_bs = n_blocks * block_bs
    if padded_bs != bs:
        # Fallback only (no block size divides bs cleanly): pad the batch.
        # TODO(synk): a second small pallas_call on the tail would avoid this
        # full-tensor HBM round trip for very large inputs.
        feat = jnp.pad(feat, ((0, padded_bs - bs), (0, 0), (0, 0)))

    # ---- cost estimate ------------------------------------------------------
    flops = padded_bs * (4 * s_pad * dim * hidden            # q and k projections
                         + 2 * s_pad * hidden * hidden       # q^T k
                         + 2 * hidden * hidden * dim_pad)    # output projection
    bytes_accessed = (feat.size * in_item
                      + (wq.size + wk.size) * w_item
                      + (bq_p.size + bk_p.size + wo_p.size + bo_p.size) * 4
                      + padded_bs * dim_pad * out_item)

    # ---- pallas_call --------------------------------------------------------
    feat_spec = pl.BlockSpec((block_bs, s_pad, dim), lambda b: (b, 0, 0))
    out_spec = pl.BlockSpec((block_bs, dim_pad), lambda b: (b, 0))

    def weight_specs(single_buffer):
        kw = {"pipeline_mode": pl.Buffered(1)} if single_buffer else {}
        mk = lambda shp: pl.BlockSpec(shp, lambda *_: (0,) * len(shp), **kw)
        return [mk((hidden, dim)), mk((1, hidden)),
                mk((hidden, dim)), mk((1, hidden)),
                mk((dim_pad, hidden * hidden)), mk((1, dim_pad))]

    kernel = functools.partial(pool_time_kernel, valid_seqlen=seqlen)

    def run(single_buffer_weights):
        return pl.pallas_call(
            kernel,
            out_shape=jax.ShapeDtypeStruct((padded_bs, dim_pad), out_dtype),
            grid=(n_blocks,),
            in_specs=[feat_spec] + weight_specs(single_buffer_weights),
            out_specs=out_spec,
            compiler_params=pltpu.CompilerParams(
                dimension_semantics=("parallel",),
                vmem_limit_bytes=int(budget)),
            cost_estimate=pl.CostEstimate(flops=int(flops),
                                          transcendentals=0,
                                          bytes_accessed=int(bytes_accessed)),
        )(feat, wq, bq_p, wk, bk_p, wo_p, bo_p)

    try:
        # Grid-invariant weights single-buffered: half the resident weight VMEM
        # (matters once dim*H*H gets large, esp. on v7x's 64 MiB per-TC VMEM).
        out = run(True)
    except Exception:
        # jax versions without BlockSpec.pipeline_mode support: default buffers.
        out = run(False)

    return out[:bs, :dim]


# --------------------------------------------------------------------------- #
# Reference + demo
# --------------------------------------------------------------------------- #
def _reference(feat, wq, bq, wk, bk, wo, bo):
    feat = feat.astype(jnp.float32)
    q = jnp.einsum("bsd,hd->bsh", feat, wq.astype(jnp.float32)) + bq
    k = jnp.einsum("bsd,hd->bsh", feat, wk.astype(jnp.float32)) + bk
    dots = jnp.einsum("bsh,bsg->bhg", q, k)                    # (bs, H, H)
    dots = dots.reshape(feat.shape[0], -1)                     # (bs, H*H)
    return dots @ wo.astype(jnp.float32).T + bo                # (bs, dim)


if __name__ == "__main__":
    bs, seqlen, dim, hidden = 16, 8, 32, 16

    key = jax.random.PRNGKey(0)
    kf, k1, k2, k3, k4, k5, k6 = jax.random.split(key, 7)

    feat = jax.random.normal(kf, (bs, seqlen, dim), dtype=jnp.float32)

    s_in = 1.0 / jnp.sqrt(dim)
    s_hh = 1.0 / jnp.sqrt(hidden * hidden)
    wq = jax.random.uniform(k1, (hidden, dim), jnp.float32, -s_in, s_in)
    bq = jax.random.uniform(k2, (hidden,), jnp.float32, -s_in, s_in)
    wk = jax.random.uniform(k3, (hidden, dim), jnp.float32, -s_in, s_in)
    bk = jax.random.uniform(k4, (hidden,), jnp.float32, -s_in, s_in)
    wo = jax.random.uniform(k5, (dim, hidden * hidden), jnp.float32, -s_hh, s_hh)
    bo = jax.random.uniform(k6, (dim,), jnp.float32, -s_hh, s_hh)

    ref = _reference(feat, wq, bq, wk, bk, wo, bo)

    # f32 path, auto block size (2 blocks on dual-TC chips, 1 maximal otherwise).
    out = jax.block_until_ready(pool_time_dimension(feat, wq, bq, wk, bk, wo, bo))
    assert out.shape == (bs, dim), out.shape
    assert jnp.allclose(out, ref, atol=1e-4, rtol=1e-4), "f32 mismatch"

    # bf16-operand path: feat/Wq/Wk bf16, f32 accumulation, f32 Wo & biases.
    out_bf16 = jax.block_until_ready(
        pool_time_dimension(feat, wq, bq, wk, bk, wo, bo,
                            compute_dtype=jnp.bfloat16))
    r = lambda a: a.astype(jnp.bfloat16).astype(jnp.float32)
    ref_bf16 = _reference(r(feat), r(wq), bq, r(wk), bk, wo, bo)
    assert jnp.allclose(out_bf16, ref_bf16, atol=2e-3, rtol=2e-3), "bf16 mismatch"

    # Ragged batch (bs=12): block selection avoids the full-tensor pad when it
    # can (single-TC: one block of 12; dual-TC: 2 blocks of 8 with a small pad).
    out_ragged = jax.block_until_ready(
        pool_time_dimension(feat[:12], wq, bq, wk, bk, wo, bo))
    assert out_ragged.shape == (12, dim)
    assert jnp.allclose(out_ragged, ref[:12], atol=1e-4, rtol=1e-4), "ragged mismatch"

    # seqlen not a multiple of 8: exercises the time-padding + q-mask path.
    feat5 = feat[:, :5, :]
    ref5 = _reference(feat5, wq, bq, wk, bk, wo, bo)
    out5 = jax.block_until_ready(
        pool_time_dimension(feat5, wq, bq, wk, bk, wo, bo))
    assert jnp.allclose(out5, ref5, atol=1e-4, rtol=1e-4), "seqlen-pad mismatch"

    print("KERNEL_OK")
</pallas_src>

<mosaic_0001>
module attributes {stable_mosaic.version = 11 : i64} {
  func.func @pool_time_kernel(%arg0: i32, %arg1: memref<16x8x32xf32, #tpu.memory_space<vmem>>, %arg2: memref<16x32xf32, #tpu.memory_space<vmem>>, %arg3: memref<1x16xf32, #tpu.memory_space<vmem>>, %arg4: memref<16x32xf32, #tpu.memory_space<vmem>>, %arg5: memref<1x16xf32, #tpu.memory_space<vmem>>, %arg6: memref<128x256xf32, #tpu.memory_space<vmem>>, %arg7: memref<1x128xf32, #tpu.memory_space<vmem>>, %arg8: memref<16x128xf32, #tpu.memory_space<vmem>>) attributes {dimension_semantics = [#tpu.dimension_semantics<parallel>], iteration_bounds = array<i64: 1>, scalar_prefetch = 0 : i64, scratch_operands = 0 : i64, tpu.core_type = #tpu.core_type<tc>, window_params = [{transform_indices = @transform_0, window_bounds = array<i64: 16, 8, 32>}, {pipeline_mode = #tpu.pipeline_mode<synchronous>, transform_indices = @transform_1, window_bounds = array<i64: 16, 32>}, {pipeline_mode = #tpu.pipeline_mode<synchronous>, transform_indices = @transform_2, window_bounds = array<i64: 1, 16>}, {pipeline_mode = #tpu.pipeline_mode<synchronous>, transform_indices = @transform_3, window_bounds = array<i64: 16, 32>}, {pipeline_mode = #tpu.pipeline_mode<synchronous>, transform_indices = @transform_4, window_bounds = array<i64: 1, 16>}, {pipeline_mode = #tpu.pipeline_mode<synchronous>, transform_indices = @transform_5, window_bounds = array<i64: 128, 256>}, {pipeline_mode = #tpu.pipeline_mode<synchronous>, transform_indices = @transform_6, window_bounds = array<i64: 1, 128>}, {transform_indices = @transform_7, window_bounds = array<i64: 16, 128>}]} {
    %c0 = arith.constant 0 : index
    %c0_0 = arith.constant 0 : index
    %c0_1 = arith.constant 0 : index
    %0 = vector.load %arg1[%c0, %c0_0, %c0_1] : memref<16x8x32xf32, #tpu.memory_space<vmem>>, vector<16x8x32xf32>
    %1 = vector.shape_cast %0 : vector<16x8x32xf32> to vector<128x32xf32>
    %c0_2 = arith.constant 0 : index
    %c0_3 = arith.constant 0 : index
    %2 = vector.load %arg2[%c0_2, %c0_3] : memref<16x32xf32, #tpu.memory_space<vmem>>, vector<16x32xf32>
    %cst = arith.constant dense<0.000000e+00> : vector<128x16xf32>
    %3 = tpu.matmul %1, %2, %cst {dimension_numbers = #tpu.dot_dimension_numbers<[1], [1], [0], [0], [0, 0, 1, 0], [], []>} : vector<128x32xf32>, vector<16x32xf32>, vector<128x16xf32> -> vector<128x16xf32>
    %c0_4 = arith.constant 0 : index
    %c0_5 = arith.constant 0 : index
    %4 = vector.load %arg3[%c0_4, %c0_5] : memref<1x16xf32, #tpu.memory_space<vmem>>, vector<1x16xf32>
    %5 = vector.broadcast %4 : vector<1x16xf32> to vector<128x16xf32>
    %6 = arith.addf %3, %5 : vector<128x16xf32>
    %c0_6 = arith.constant 0 : index
    %c0_7 = arith.constant 0 : index
    %7 = vector.load %arg4[%c0_6, %c0_7] : memref<16x32xf32, #tpu.memory_space<vmem>>, vector<16x32xf32>
    %cst_8 = arith.constant dense<0.000000e+00> : vector<128x16xf32>
    %8 = tpu.matmul %1, %7, %cst_8 {dimension_numbers = #tpu.dot_dimension_numbers<[1], [1], [0], [0], [0, 0, 1, 0], [], []>} : vector<128x32xf32>, vector<16x32xf32>, vector<128x16xf32> -> vector<128x16xf32>
    %c0_9 = arith.constant 0 : index
    %c0_10 = arith.constant 0 : index
    %9 = vector.load %arg5[%c0_9, %c0_10] : memref<1x16xf32, #tpu.memory_space<vmem>>, vector<1x16xf32>
    %10 = vector.broadcast %9 : vector<1x16xf32> to vector<128x16xf32>
    %11 = arith.addf %8, %10 : vector<128x16xf32>
    %12 = vector.shape_cast %6 : vector<128x16xf32> to vector<16x8x16xf32>
    %13 = vector.shape_cast %11 : vector<128x16xf32> to vector<16x8x16xf32>
    "tpu.trace_start"() <{level = 10 : i32, message = "bsh,bsg->bhg"}> : () -> ()
    %cst_11 = arith.constant dense<0.000000e+00> : vector<16x16x16xf32>
    %14 = tpu.matmul %12, %13, %cst_11 {dimension_numbers = #tpu.dot_dimension_numbers<[1], [1], [2], [2], [0, 0, 0, 2, 1, 2], [0], [0]>} : vector<16x8x16xf32>, vector<16x8x16xf32>, vector<16x16x16xf32> -> vector<16x16x16xf32>
    "tpu.trace_stop"() : () -> ()
    %15 = vector.shape_cast %14 : vector<16x16x16xf32> to vector<16x256xf32>
    %c0_12 = arith.constant 0 : index
    %c0_13 = arith.constant 0 : index
    %16 = vector.load %arg6[%c0_12, %c0_13] : memref<128x256xf32, #tpu.memory_space<vmem>>, vector<128x256xf32>
    %cst_14 = arith.constant dense<0.000000e+00> : vector<16x128xf32>
    %17 = tpu.matmul %15, %16, %cst_14 {dimension_numbers = #tpu.dot_dimension_numbers<[1], [1], [0], [0], [0, 0, 1, 0], [], []>} : vector<16x256xf32>, vector<128x256xf32>, vector<16x128xf32> -> vector<16x128xf32>
    %c0_15 = arith.constant 0 : index
    %c0_16 = arith.constant 0 : index
    %18 = vector.load %arg7[%c0_15, %c0_16] : memref<1x128xf32, #tpu.memory_space<vmem>>, vector<1x128xf32>
    %19 = vector.broadcast %18 : vector<1x128xf32> to vector<16x128xf32>
    %20 = arith.addf %17, %19 : vector<16x128xf32>
    %c0_17 = arith.constant 0 : index
    %c0_18 = arith.constant 0 : index
    %21 = vector.load %arg8[%c0_17, %c0_18] : memref<16x128xf32, #tpu.memory_space<vmem>>, vector<16x128xf32>
    tpu.vector_store %arg8[%c0_17, %c0_18], %20 {strides = array<i32>} : memref<16x128xf32, #tpu.memory_space<vmem>>, vector<16x128xf32>,
    return
  }
  func.func @transform_0(%arg0: i32) -> (i32, i32, i32) {
    %c0_i32 = arith.constant 0 : i32
    %c0_i32_0 = arith.constant 0 : i32
    %c0_i32_1 = arith.constant 0 : i32
    return %arg0, %c0_i32, %c0_i32_0 : i32, i32, i32
  }
  func.func @transform_1(%arg0: i32) -> (i32, i32) {
    %c0_i32 = arith.constant 0 : i32
    %c0_i32_0 = arith.constant 0 : i32
    %c0_i32_1 = arith.constant 0 : i32
    return %c0_i32, %c0_i32_0 : i32, i32
  }
  func.func @transform_2(%arg0: i32) -> (i32, i32) {
    %c0_i32 = arith.constant 0 : i32
    %c0_i32_0 = arith.constant 0 : i32
    %c0_i32_1 = arith.constant 0 : i32
    return %c0_i32, %c0_i32_0 : i32, i32
  }
  func.func @transform_3(%arg0: i32) -> (i32, i32) {
    %c0_i32 = arith.constant 0 : i32
    %c0_i32_0 = arith.constant 0 : i32
    %c0_i32_1 = arith.constant 0 : i32
    return %c0_i32, %c0_i32_0 : i32, i32
  }
  func.func @transform_4(%arg0: i32) -> (i32, i32) {
    %c0_i32 = arith.constant 0 : i32
    %c0_i32_0 = arith.constant 0 : i32
    %c0_i32_1 = arith.constant 0 : i32
    return %c0_i32, %c0_i32_0 : i32, i32
  }
  func.func @transform_5(%arg0: i32) -> (i32, i32) {
    %c0_i32 = arith.constant 0 : i32
    %c0_i32_0 = arith.constant 0 : i32
    %c0_i32_1 = arith.constant 0 : i32
    return %c0_i32, %c0_i32_0 : i32, i32
  }
  func.func @transform_6(%arg0: i32) -> (i32, i32) {
    %c0_i32 = arith.constant 0 : i32
    %c0_i32_0 = arith.constant 0 : i32
    %c0_i32_1 = arith.constant 0 : i32
    return %c0_i32, %c0_i32_0 : i32, i32
  }
  func.func @transform_7(%arg0: i32) -> (i32, i32) {
    %c0_i32 = arith.constant 0 : i32
    %c0_i32_0 = arith.constant 0 : i32
    return %arg0, %c0_i32 : i32, i32
  }
}

module attributes {stable_mosaic.version = 11 : i64} {
  func.func @pool_time_kernel(%arg0: i32, %arg1: memref<16x8x32xf32, #tpu.memory_space<vmem>>, %arg2: memref<16x32xf32, #tpu.memory_space<vmem>>, %arg3: memref<1x16xf32, #tpu.memory_space<vmem>>, %arg4: memref<16x32xf32, #tpu.memory_space<vmem>>, %arg5: memref<1x16xf32, #tpu.memory_space<vmem>>, %arg6: memref<128x256xf32, #tpu.memory_space<vmem>>, %arg7: memref<1x128xf32, #tpu.memory_space<vmem>>, %arg8: memref<16x128xf32, #tpu.memory_space<vmem>>) attributes {dimension_semantics = [#tpu.dimension_semantics<parallel>], iteration_bounds = array<i64: 1>, scalar_prefetch = 0 : i64, scratch_operands = 0 : i64, tpu.core_type = #tpu.core_type<tc>, window_params = [{transform_indices = @transform_0, window_bounds = array<i64: 16, 8, 32>}, {pipeline_mode = #tpu.pipeline_mode<synchronous>, transform_indices = @transform_1, window_bounds = array<i64: 16, 32>}, {pipeline_mode = #tpu.pipeline_mode<synchronous>, transform_indices = @transform_2, window_bounds = array<i64: 1, 16>}, {pipeline_mode = #tpu.pipeline_mode<synchronous>, transform_indices = @transform_3, window_bounds = array<i64: 16, 32>}, {pipeline_mode = #tpu.pipeline_mode<synchronous>, transform_indices = @transform_4, window_bounds = array<i64: 1, 16>}, {pipeline_mode = #tpu.pipeline_mode<synchronous>, transform_indices = @transform_5, window_bounds = array<i64: 128, 256>}, {pipeline_mode = #tpu.pipeline_mode<synchronous>, transform_indices = @transform_6, window_bounds = array<i64: 1, 128>}, {transform_indices = @transform_7, window_bounds = array<i64: 16, 128>}]} {
    %c0 = arith.constant 0 : index
    %c0_0 = arith.constant 0 : index
    %c0_1 = arith.constant 0 : index
    %0 = vector.load %arg1[%c0, %c0_0, %c0_1] : memref<16x8x32xf32, #tpu.memory_space<vmem>>, vector<16x8x32xf32>
    %1 = vector.shape_cast %0 : vector<16x8x32xf32> to vector<128x32xf32>
    %c0_2 = arith.constant 0 : index
    %c0_3 = arith.constant 0 : index
    %2 = vector.load %arg2[%c0_2, %c0_3] : memref<16x32xf32, #tpu.memory_space<vmem>>, vector<16x32xf32>
    %cst = arith.constant dense<0.000000e+00> : vector<128x16xf32>
    %3 = tpu.matmul %1, %2, %cst {dimension_numbers = #tpu.dot_dimension_numbers<[1], [1], [0], [0], [0, 0, 1, 0], [], []>} : vector<128x32xf32>, vector<16x32xf32>, vector<128x16xf32> -> vector<128x16xf32>
    %c0_4 = arith.constant 0 : index
    %c0_5 = arith.constant 0 : index
    %4 = vector.load %arg3[%c0_4, %c0_5] : memref<1x16xf32, #tpu.memory_space<vmem>>, vector<1x16xf32>
    %5 = vector.broadcast %4 : vector<1x16xf32> to vector<128x16xf32>
    %6 = arith.addf %3, %5 : vector<128x16xf32>
    %c0_6 = arith.constant 0 : index
    %c0_7 = arith.constant 0 : index
    %7 = vector.load %arg4[%c0_6, %c0_7] : memref<16x32xf32, #tpu.memory_space<vmem>>, vector<16x32xf32>
    %cst_8 = arith.constant dense<0.000000e+00> : vector<128x16xf32>
    %8 = tpu.matmul %1, %7, %cst_8 {dimension_numbers = #tpu.dot_dimension_numbers<[1], [1], [0], [0], [0, 0, 1, 0], [], []>} : vector<128x32xf32>, vector<16x32xf32>, vector<128x16xf32> -> vector<128x16xf32>
    %c0_9 = arith.constant 0 : index
    %c0_10 = arith.constant 0 : index
    %9 = vector.load %arg5[%c0_9, %c0_10] : memref<1x16xf32, #tpu.memory_space<vmem>>, vector<1x16xf32>
    %10 = vector.broadcast %9 : vector<1x16xf32> to vector<128x16xf32>
    %11 = arith.addf %8, %10 : vector<128x16xf32>
    %12 = vector.shape_cast %6 : vector<128x16xf32> to vector<16x8x16xf32>
    %13 = vector.shape_cast %11 : vector<128x16xf32> to vector<16x8x16xf32>
    "tpu.trace_start"() <{level = 10 : i32, message = "bsh,bsg->bhg"}> : () -> ()
    %cst_11 = arith.constant dense<0.000000e+00> : vector<16x16x16xf32>
    %14 = tpu.matmul %12, %13, %cst_11 {dimension_numbers = #tpu.dot_dimension_numbers<[1], [1], [2], [2], [0, 0, 0, 2, 1, 2], [0], [0]>} : vector<16x8x16xf32>, vector<16x8x16xf32>, vector<16x16x16xf32> -> vector<16x16x16xf32>
    "tpu.trace_stop"() : () -> ()
    %15 = vector.shape_cast %14 : vector<16x16x16xf32> to vector<16x256xf32>
    %c0_12 = arith.constant 0 : index
    %c0_13 = arith.constant 0 : index
    %16 = vector.load %arg6[%c0_12, %c0_13] : memref<128x256xf32, #tpu.memory_space<vmem>>, vector<128x256xf32>
    %cst_14 = arith.constant dense<0.000000e+00> : vector<16x128xf32>
    %17 = tpu.matmul %15, %16, %cst_14 {dimension_numbers = #tpu.dot_dimension_numbers<[1], [1], [0], [0], [0, 0, 1, 0], [], []>} : vector<16x256xf32>, vector<128x256xf32>, vector<16x128xf32> -> vector<16x128xf32>
    %c0_15 = arith.constant 0 : index
    %c0_16 = arith.constant 0 : index
    %18 = vector.load %arg7[%c0_15, %c0_16] : memref<1x128xf32, #tpu.memory_space<vmem>>, vector<1x128xf32>
    %19 = vector.broadcast %18 : vector<1x128xf32> to vector<16x128xf32>
    %20 = arith.addf %17, %19 : vector<16x128xf32>
    %c0_17 = arith.constant 0 : index
    %c0_18 = arith.constant 0 : index
    %21 = vector.load %arg8[%c0_17, %c0_18] : memref<16x128xf32, #tpu.memory_space<vmem>>, vector<16x128xf32>
    tpu.vector_store %arg8[%c0_17, %c0_18], %20 {strides = array<i32>} : memref<16x128xf32, #tpu.memory_space<vmem>>, vector<16x128xf32>,
    return
  }
  func.func @transform_0(%arg0: i32) -> (i32, i32, i32) {
    %c0_i32 = arith.constant 0 : i32
    %c0_i32_0 = arith.constant 0 : i32
    %c0_i32_1 = arith.constant 0 : i32
    return %arg0, %c0_i32, %c0_i32_0 : i32, i32, i32
  }
  func.func @transform_1(%arg0: i32) -> (i32, i32) {
    %c0_i32 = arith.constant 0 : i32
    %c0_i32_0 = arith.constant 0 : i32
    %c0_i32_1 = arith.constant 0 : i32
    return %c0_i32, %c0_i32_0 : i32, i32
  }
  func.func @transform_2(%arg0: i32) -> (i32, i32) {
    %c0_i32 = arith.constant 0 : i32
    %c0_i32_0 = arith.constant 0 : i32
    %c0_i32_1 = arith.constant 0 : i32
    return %c0_i32, %c0_i32_0 : i32, i32
  }
  func.func @transform_3(%arg0: i32) -> (i32, i32) {
    %c0_i32 = arith.constant 0 : i32
    %c0_i32_0 = arith.constant 0 : i32
    %c0_i32_1 = arith.constant 0 : i32
    return %c0_i32, %c0_i32_0 : i32, i32
  }
  func.func @transform_4(%arg0: i32) -> (i32, i32) {
    %c0_i32 = arith.constant 0 : i32
    %c0_i32_0 = arith.constant 0 : i32
    %c0_i32_1 = arith.constant 0 : i32
    return %c0_i32, %c0_i32_0 : i32, i32
  }
  func.func @transform_5(%arg0: i32) -> (i32, i32) {
    %c0_i32 = arith.constant 0 : i32
    %c0_i32_0 = arith.constant 0 : i32
    %c0_i32_1 = arith.constant 0 : i32
    return %c0_i32, %c0_i32_0 : i32, i32
  }
  func.func @transform_6(%arg0: i32) -> (i32, i32) {
    %c0_i32 = arith.constant 0 : i32
    %c0_i32_0 = arith.constant 0 : i32
    %c0_i32_1 = arith.constant 0 : i32
    return %c0_i32, %c0_i32_0 : i32, i32
  }
  func.func @transform_7(%arg0: i32) -> (i32, i32) {
    %c0_i32 = arith.constant 0 : i32
    %c0_i32_0 = arith.constant 0 : i32
    return %arg0, %c0_i32 : i32, i32
  }
}

</mosaic_0001>

<bundles_post_ra>
// kernel: tpu_custom_call.1
= control target key start
LH: loop header
LB: loop body
LE: loop exit
PB: predicated region body
PF: predicated region fallthrough
CT: control target
= control target key end

     0   :  { %12 = vsyncpa [#allocation3], 0  ;;  %s4075_s0 = inlined_call_operand.hbm [shape: f32[16,8,32], index: 0, kind: input, shape index: {}]   ;;  %s4076_s1 = inlined_call_operand.hbm [shape: f32[16,32], index: 1, kind: input, shape index: {}]   ;;  %s4077_s2 = inlined_call_operand.vmem [shape: f32[1,16], index: 2, kind: input, shape index: {}]   ;;  %s4078_s3 = inlined_call_operand.hbm [shape: f32[16,32], index: 3, kind: input, shape index: {}]   ;;  %s4079_s4 = inlined_call_operand.vmem [shape: f32[1,16], index: 4, kind: input, shape index: {}]   ;;  %s4080_s5 = inlined_call_operand.hbm [shape: f32[128,256], index: 5, kind: input, shape index: {}]   ;;  %s4081_s6 = inlined_call_operand.vmem [shape: f32[1,128], index: 6, kind: input, shape index: {}]   ;;  %s4082_s7 = inlined_call_operand.hbm [shape: f32[16,128], index: 7, kind: output, shape index: {}]  }
   0x1   :  { %13 = vsyncpa [#allocation6], 0 }
   0x2   :  { %14 = vsyncpa [#allocation9], 0 }
   0x3   :  { %15 = vsyncpa [#allocation4], 0  ;;  %s3642_s24 = smov [#allocation5]   ;;  %s3643_s26 = smov [#allocation2]  }
   0x4   :  { %s33_s25 = sshll.u32 %s3642_s24, 4  ;;  %s21_s27 = sshll.u32 %s3643_s26, 4  ;;  %s34_s25 = int_to_ptr.vmem [resolvable:$true] %s33_s25  ;;  %s3699_s27 = int_to_ptr.vmem [resolvable:$true] %s21_s27 }
   0x5   :  { %s3524_s30 = scalar_lea.hbm %s4076_s1, 256 }
   0x6   :  { %p3525_p0 = scmp.ne.s32.totalorder %s4076_s1, %s3524_s30  ;;  %p3528_p1 = scmp.lt.u32.totalorder %s3524_s30, %s4076_s1 }
   0x8   :  { %p3530_p2 = pnand %p3528_p1, %p3525_p0 }
   0xa   :  { %3533 = shalt.err (!%p3530_p2)
}
   0xb   :  { %s3534_s12 = scalar_lea.vmem %s34_s25, 256  ;;  %p3539_p4 = scmp.lt.s32.totalorder %s34_s25, %s34_s25 }
   0xc   :  { %p3535_p3 = scmp.ne.s32.totalorder %s34_s25, %s3534_s12  ;;  %p3540_p5 = scmp.lt.s32.totalorder %s3534_s12, %s3534_s12 }
   0xe   :  { %p3541_p6 = por %p3540_p5, %p3539_p4 }
  0x10   :  { %p3542_p7 = pnand %p3541_p6, %p3535_p3 }
  0x12   :  { %3545 = shalt.err (!%p3542_p7)
}
  0x13   :  { %s3644_s13 = smov 128   ;;  %s3645_s14 = smov 8  }
  0x14   :  { %39 = dma.hbm_to_vmem [thread:$0]  %s4076_s1, 256, %s34_s25, [#allocation6], %s3644_s13, %s3644_s13, %s3645_s14  }
  0x15   :  { %s3546_s19 = scalar_lea.hbm %s4075_s0, 2048 }
  0x16   :  { %p3547_p8 = scmp.ne.s32.totalorder %s4075_s0, %s3546_s19  ;;  %p3550_p9 = scmp.lt.u32.totalorder %s3546_s19, %s4075_s0 }
  0x18   :  { %p3552_p10 = pnand %p3550_p9, %p3547_p8 }
  0x1a   :  { %3555 = shalt.err (!%p3552_p10)
}
  0x1b   :  { %s3556_s24 = scalar_lea.vmem %s3699_s27, 2048  ;;  %p3561_p12 = scmp.lt.s32.totalorder %s3699_s27, %s3699_s27 }
  0x1c   :  { %p3557_p11 = scmp.ne.s32.totalorder %s3699_s27, %s3556_s24  ;;  %p3562_p13 = scmp.lt.s32.totalorder %s3556_s24, %s3556_s24 }
  0x1e   :  { %p3563_p0 = por %p3562_p13, %p3561_p12 }
  0x20   :  { %p3564_p1 = pnand %p3563_p0, %p3557_p11 }
  0x22   :  { %3567 = shalt.err (!%p3564_p1)
}
  0x23   :  { %27 = dma.hbm_to_vmem [thread:$0]  %s4075_s0, 2048, %s3699_s27, [#allocation3], %s3644_s13, %s3644_s13, %s3645_s14  }
  0x24   :  { %s3646_s26 = smov [#allocation7]   ;;  %s3647_s29 = smov [#allocation8]  }
  0x25   :  { %s47_s28 = sshll.u32 %s3646_s26, 4  ;;  %s61_s30 = sshll.u32 %s3647_s29, 4  ;;  %s48_s28 = int_to_ptr.vmem [resolvable:$true] %s47_s28  ;;  %s3736_s30 = int_to_ptr.vmem [resolvable:$true] %s61_s30 }
  0x26   :  { %s3568_s10 = scalar_lea.hbm %s4078_s3, 256 }
  0x27   :  { %p3569_p2 = scmp.ne.s32.totalorder %s4078_s3, %s3568_s10  ;;  %p3572_p3 = scmp.lt.u32.totalorder %s3568_s10, %s4078_s3 }
  0x29   :  { %p3574_p4 = pnand %p3572_p3, %p3569_p2 }
  0x2b   :  { %3577 = shalt.err (!%p3574_p4)
}
  0x2c   :  { %s3578_s0 = scalar_lea.vmem %s48_s28, 256  ;;  %p3583_p6 = scmp.lt.s32.totalorder %s48_s28, %s48_s28 }
  0x2d   :  { %p3579_p5 = scmp.ne.s32.totalorder %s48_s28, %s3578_s0  ;;  %p3584_p7 = scmp.lt.s32.totalorder %s3578_s0, %s3578_s0 }
  0x2f   :  { %p3585_p8 = por %p3584_p7, %p3583_p6 }
  0x31   :  { %p3586_p9 = pnand %p3585_p8, %p3579_p5 }
  0x33   :  { %3589 = shalt.err (!%p3586_p9)
}
  0x34   :  { %53 = dma.hbm_to_vmem [thread:$0]  %s4078_s3, 256, %s48_s28, [#allocation6], %s3644_s13, %s3644_s13, %s3645_s14  }
  0x35   :  { %s3590_s20 = scalar_lea.hbm %s4080_s5, 4096 }
  0x36   :  { %p3591_p10 = scmp.ne.s32.totalorder %s4080_s5, %s3590_s20  ;;  %p3594_p11 = scmp.lt.u32.totalorder %s3590_s20, %s4080_s5 }
  0x38   :  { %p3596_p12 = pnand %p3594_p11, %p3591_p10 }
  0x3a   :  { %3599 = shalt.err (!%p3596_p12)
}
  0x3b   :  { %s3600_s1 = scalar_lea.vmem %s3736_s30, 4096  ;;  %p3605_p0 = scmp.lt.s32.totalorder %s3736_s30, %s3736_s30 }
  0x3c   :  { %p3601_p13 = scmp.ne.s32.totalorder %s3736_s30, %s3600_s1  ;;  %p3606_p1 = scmp.lt.s32.totalorder %s3600_s1, %s3600_s1 }
  0x3e   :  { %p3607_p2 = por %p3606_p1, %p3605_p0 }
  0x40   :  { %p3608_p3 = pnand %p3607_p2, %p3601_p13 }
  0x42   :  { %3611 = shalt.err (!%p3608_p3)
}
  0x43   :  { %s3648_s3 = smov 256   ;;  %s3649_s25 = smov 16  }
  0x44   :  { %67 = dma.hbm_to_vmem [thread:$0]  %s4080_s5, 4096, %s3736_s30, [#allocation9], %s3648_s3, %s3648_s3, %s3649_s25  }
  0x45   :  { %3634 = dma.done.wait [#allocation3], 2048  }
  0x46   :  { %3635 = vsyncadd [#allocation3], 4294965248 }
  0x47   :  { %3636 = dma.done.wait [#allocation6], 512  }
  0x48   :  { %3637 = vsyncadd [#allocation6], 4294966784 }
  0x49   :  { %3638 = dma.done.wait [#allocation9], 4096  }
  0x4a   :  { %3639 = vsyncadd [#allocation9], 4294963200  ;;  %vm107_vm0 = vcmask 261120   ;;  %v98_v1 = vld [vmem:[#allocation5] sm:$0xff]  ;;  %v99_v2 = vld [vmem:[#allocation5 + $0x8] sm:$0xff]  ;;  %vm499_vm2 = vcmask 64512  }
  0x4b   :  { %vm3773_vm1 = vmpackc.low %vm107_vm0, %vm107_vm0  ;;  %v82_v3 = vld [vmem:[#allocation2] sm:$0xff]  ;;  %v3392_v4 = vpack.c.bf16 %v99_v2, %v98_v1  ;;  %v307_v5 = vld [vmem:[#allocation7] sm:$0xff]  ;;  %s3653_s8 = smov 48   ;;  %s3654_s9 = smov 80   ;;  %vm2932_vm3 = vcmask 130048   ;;  %vm2937_vm4 = vcmask 392192  }
  0x4c   :  { %3260 = vmatprep.mubr.msk.f32.mxu1 %vm107_vm0, %v82_v3  ;;  %v308_v6 = vld [vmem:[#allocation7 + $0x8] sm:$0xff]  ;;  %v83_v8 = vld [vmem:[#allocation2 + $0x8] sm:$0xff]  ;;  %v84_v9 = vld [vmem:[#allocation2 + $0x10] sm:$0xff]  ;;  %s3655_s10 = smov 64   ;;  %s3656_s11 = smov 96   ;;  %vm2940_vm5 = vcmask 523264  }
  0x4d   :  { %3394 = vmatprep.subr.msk.bf16.mxu1 %vm3773_vm1, %v3392_v4  ;;  %v3398_v7 = vpack.c.bf16 %v308_v6, %v307_v5  ;;  %v85_v10 = vld [vmem:[#allocation2 + $0x18] sm:$0xff]  ;;  %v86_v11 = vld [vmem:[#allocation2 + $0x20] sm:$0xff]  ;;  %v87_v12 = vld [vmem:[#allocation2 + $0x28] sm:$0xff]  ;;  %s3657_s12 = smov 112   ;;  %vm2943_vm6 = vcmask 654336   ;;  %vm2946_vm7 = vcmask 785408  }
  0x4e   :  { %3397 = vmatpush3.bf16.xpose.msk.msra.mxu1 %vm3773_vm1, %v3392_v4  ;;  %v88_v13 = vld [vmem:[#allocation2 + $0x30] sm:$0xff]  ;;  %v89_v14 = vld [vmem:[#allocation2 + $0x38] sm:$0xff]  ;;  %v90_v15 = vld [vmem:[#allocation2 + $0x40] sm:$0xff]  ;;  %vm2949_vm8 = vcmask 916480   ;;  %s3658_s0 = smov [#allocation10]  }
  0x4f   :  { %3400 = vmatprep.subr.msk.bf16.mxu1 %vm3773_vm1, %v3398_v7  ;;  %v91_v16 = vld [vmem:[#allocation2 + $0x48] sm:$0xff]  ;;  %v92_v17 = vld [vmem:[#allocation2 + $0x50] sm:$0xff]  ;;  %v93_v18 = vld [vmem:[#allocation2 + $0x58] sm:$0xff]  ;;  %s3087_s27 = sshll.u32 %s3658_s0, 4  ;;  %s3088_s27 = int_to_ptr.vmem [resolvable:$true] %s3087_s27 }
  0x50   :  { %v94_v19 = vld [vmem:[#allocation2 + $0x60] sm:$0xff]  ;;  %v95_v20 = vld [vmem:[#allocation2 + $0x68] sm:$0xff]  ;;  %v96_v21 = vld [vmem:[#allocation2 + $0x70] sm:$0xff]  ;;  %s3612_s17 = scalar_lea.vmem %s3088_s27, 256  ;;  %p3617_p5 = scmp.lt.s32.totalorder %s3088_s27, %s3088_s27 }
  0x51   :  { %v97_v22 = vld [vmem:[#allocation2 + $0x78] sm:$0xff]  ;;  %v3101_v23 = vld [vmem:[%s4077_s2] ss:$0 sm:$0xff]  ;;  %p3613_p4 = scmp.ne.s32.totalorder %s3088_s27, %s3612_s17  ;;  %p3618_p6 = scmp.lt.s32.totalorder %s3612_s17, %s3612_s17 }
  0x52   :  { %v3120_v53 = vld [vmem:[%s4079_s4] ss:$0 sm:$0xff]  ;;  %s3652_s4 = smov 32  }
  0x53   :  { %p3619_p7 = por %p3618_p6, %p3617_p5 }
  0x55   :  { %3261 = vmatmul.mubr.msk.f32.vlgmr.msra.gmra.mrb[0].mxu1 %vm107_vm0, %v83_v8  ;;  %p3620_p8 = pnand %p3619_p7, %p3613_p4 }
  0x56   :  { %3263 = vmatprep.mubr.msk.f32.mxu1 %vm107_vm0, %v84_v9  ;;  %3403 = vmatpush3.bf16.xpose.msk.msra.mxu1 %vm3773_vm1, %v3398_v7 }
  0x59   :  { %3264 = vmatmul.mubr.msk.f32.gmra.mrb[2].mxu1 %vm107_vm0, %v85_v10 }
  0x5a   :  { %3266 = vmatprep.mubr.msk.f32.mxu1 %vm107_vm0, %v86_v11 }
  0x5d   :  { %3267 = vmatmul.mubr.msk.f32.gmra.mrb[4].mxu1 %vm107_vm0, %v87_v12 }
  0x5e   :  { %3269 = vmatprep.mubr.msk.f32.mxu1 %vm107_vm0, %v88_v13 }
  0x61   :  { %3270 = vmatmul.mubr.msk.f32.gmra.mrb[6].mxu1 %vm107_vm0, %v89_v14 }
  0x62   :  { %3272 = vmatprep.mubr.msk.f32.mxu1 %vm107_vm0, %v90_v15 }
  0x65   :  { %3273 = vmatmul.mubr.msk.f32.gmra.mrb[8].mxu1 %vm107_vm0, %v91_v16 }
  0x66   :  { %3275 = vmatprep.mubr.msk.f32.mxu1 %vm107_vm0, %v92_v17 }
  0x69   :  { %3276 = vmatmul.mubr.msk.f32.gmra.mrb[10].mxu1 %vm107_vm0, %v93_v18 }
  0x6a   :  { %3278 = vmatprep.mubr.msk.f32.mxu1 %vm107_vm0, %v94_v19 }
  0x6d   :  { %3279 = vmatmul.mubr.msk.f32.gmra.mrb[12].mxu1 %vm107_vm0, %v95_v20 }
  0x6e   :  { %3281 = vmatprep.mubr.msk.f32.mxu1 %vm107_vm0, %v96_v21 }
  0x71   :  { %3282 = vmatmul.mubr.msk.f32.gmra.mrb[14].mxu1 %vm107_vm0, %v97_v22 }
  0x72   :  { %3288 = vmatprep.mubr.msk.f32.mxu1 %vm107_vm0, %v82_v3 }
  0x75   :  { %3289 = vmatmul.mubr.msk.f32.vlgmr.msra.gmra.mrb[16].mxu1 %vm107_vm0, %v83_v8 }
  0x76   :  { %3291 = vmatprep.mubr.msk.f32.mxu1 %vm107_vm0, %v84_v9 }
  0x79   :  { %3292 = vmatmul.mubr.msk.f32.gmra.mrb[18].mxu1 %vm107_vm0, %v85_v10 }
  0x7a   :  { %3294 = vmatprep.mubr.msk.f32.mxu1 %vm107_vm0, %v86_v11 }
  0x7d   :  { %3295 = vmatmul.mubr.msk.f32.gmra.mrb[20].mxu1 %vm107_vm0, %v87_v12 }
  0x7e   :  { %3297 = vmatprep.mubr.msk.f32.mxu1 %vm107_vm0, %v88_v13 }
  0x81   :  { %3298 = vmatmul.mubr.msk.f32.gmra.mrb[22].mxu1 %vm107_vm0, %v89_v14 }
  0x82   :  { %3300 = vmatprep.mubr.msk.f32.mxu1 %vm107_vm0, %v90_v15 }
  0x85   :  { %3301 = vmatmul.mubr.msk.f32.gmra.mrb[24].mxu1 %vm107_vm0, %v91_v16 }
  0x86   :  { %3303 = vmatprep.mubr.msk.f32.mxu1 %vm107_vm0, %v92_v17 }
  0x89   :  { %3304 = vmatmul.mubr.msk.f32.gmra.mrb[26].mxu1 %vm107_vm0, %v93_v18 }
  0x8a   :  { %3306 = vmatprep.mubr.msk.f32.mxu1 %vm107_vm0, %v94_v19 }
  0x8d   :  { %3307 = vmatmul.mubr.msk.f32.gmra.mrb[28].mxu1 %vm107_vm0, %v95_v20 }
  0x8e   :  { %3309 = vmatprep.mubr.msk.f32.mxu1 %vm107_vm0, %v96_v21 }
  0x91   :  { %3310 = vmatmul.mubr.msk.f32.gmra.mrb[30].mxu1 %vm107_vm0, %v97_v22 }
 0x128   :  { %v3262_v24 = vpop.f32.mrb[0].mxu1 }
 0x129   :  { %v228_v25 = vpop.f32.mrb[1].mxu1  ;;  %v234_v26 = vadd.f32 %v3262_v24, %v3101_v23 }
 0x12a   :  { %v229_v30 = vadd.f32 %v3101_v23, %v228_v25 }
 0x12b   :  { %581 = vxpose.xlu0.b32.start.end [1/1] (short) (narrow) %v234_v26, 16 }
 0x12c   :  { %v3265_v27 = vpop.f32.mrb[2].mxu1 }
 0x12d   :  { %v238_v28 = vpop.f32.mrb[3].mxu1  ;;  %v244_v29 = vadd.f32 %v3265_v27, %v3101_v23 }
 0x12e   :  { %v239_v33 = vadd.f32 %v3101_v23, %v238_v28 }
 0x12f   :  { %807 = vxpose.xlu1.b32.start.end [1/1] (short) (narrow) %v244_v29, 16 }
 0x130   :  { %467 = vxpose.xlu0.b32.start.end [1/1] (short) (narrow) %v229_v30, 16  ;;  %v3268_v31 = vpop.f32.mrb[4].mxu1 }
 0x131   :  { %v248_v32 = vpop.f32.mrb[5].mxu1  ;;  %v254_v36 = vadd.f32 %v3268_v31, %v3101_v23 }
 0x132   :  { %v249_v34 = vadd.f32 %v3101_v23, %v248_v32 }
 0x134   :  { %694 = vxpose.xlu1.b32.start.end [1/1] (short) (narrow) %v239_v33, 16  ;;  %v3271_v35 = vpop.f32.mrb[6].mxu1 }
 0x135   :  { %920 = vxpose.xlu0.b32.start.end [1/1] (short) (narrow) %v249_v34, 16  ;;  %v258_v37 = vpop.f32.mrb[7].mxu1  ;;  %v264_v41 = vadd.f32 %v3271_v35, %v3101_v23 }
 0x136   :  { %v259_v38 = vadd.f32 %v3101_v23, %v258_v37 }
 0x138   :  { %v3274_v39 = vpop.f32.mrb[8].mxu1 }
 0x139   :  { %1033 = vxpose.xlu1.b32.start.end [1/1] (short) (narrow) %v254_v36, 16  ;;  %v268_v40 = vpop.f32.mrb[9].mxu1  ;;  %v274_v45 = vadd.f32 %v3274_v39, %v3101_v23 }
 0x13a   :  { %1146 = vxpose.xlu0.b32.start.end [1/1] (short) (narrow) %v259_v38, 16  ;;  %v269_v42 = vadd.f32 %v3101_v23, %v268_v40 }
 0x13c   :  { %v3277_v43 = vpop.f32.mrb[10].mxu1 }
 0x13d   :  { %v278_v44 = vpop.f32.mrb[11].mxu1  ;;  %v284_v49 = vadd.f32 %v3277_v43, %v3101_v23 }
 0x13e   :  { %1259 = vxpose.xlu1.b32.start.end [1/1] (short) (narrow) %v264_v41, 16  ;;  %v279_v46 = vadd.f32 %v3101_v23, %v278_v44 }
 0x13f   :  { %1372 = vxpose.xlu0.b32.start.end [1/1] (short) (narrow) %v269_v42, 16 }
 0x140   :  { %v3280_v47 = vpop.f32.mrb[12].mxu1 }
 0x141   :  { %v288_v48 = vpop.f32.mrb[13].mxu1  ;;  %v294_v55 = vadd.f32 %v3280_v47, %v3101_v23 }
 0x142   :  { %v289_v51 = vadd.f32 %v3101_v23, %v288_v48 }
 0x143   :  { %1485 = vxpose.xlu1.b32.start.end [1/1] (short) (narrow) %v274_v45, 16 }
 0x144   :  { %1598 = vxpose.xlu0.b32.start.end [1/1] (short) (narrow) %v279_v46, 16  ;;  %v3283_v50 = vpop.f32.mrb[14].mxu1 }
 0x145   :  { %v298_v52 = vpop.f32.mrb[15].mxu1  ;;  %v304_v63 = vadd.f32 %v3283_v50, %v3101_v23 }
 0x146   :  { %v299_v58 = vadd.f32 %v3101_v23, %v298_v52 }
 0x148   :  { %1711 = vxpose.xlu1.b32.start.end [1/1] (short) (narrow) %v284_v49, 16  ;;  %v3290_v54 = vpop.f32.mrb[16].mxu1 }
 0x149   :  { %1824 = vxpose.xlu0.b32.start.end [1/1] (short) (narrow) %v289_v51, 16  ;;  %v394_v56 = vadd.f32 %v3290_v54, %v3120_v53  ;;  %v388_v57 = vpop.f32.mrb[17].mxu1 }
 0x14a   :  { %v389_v59 = vadd.f32 %v3120_v53, %v388_v57  ;;  %v2967_v57 = vld [vmem:[#allocation8 + $0x8] sm:$0xff] }
 0x14b   :  { %3317 = vmatprep.subr.mxu1 %v394_v56 }
 0x14c   :  { %3312 = vmatprep.subr.mxu0 %v389_v59  ;;  %v3293_v60 = vpop.f32.mrb[18].mxu1  ;;  %3318 = vmatpush3.msra.mxu1 %v394_v56 }
 0x14d   :  { %1937 = vxpose.xlu1.b32.start.end [1/1] (short) (narrow) %v294_v55, 16  ;;  %v404_v61 = vadd.f32 %v3293_v60, %v3120_v53  ;;  %3313 = vmatpush3.msra.mxu0 %v389_v59  ;;  %v398_v62 = vpop.f32.mrb[19].mxu1  ;;  %v2966_v59 = vld [vmem:[#allocation8] sm:$0xff] }
 0x14e   :  { %2050 = vxpose.xlu0.b32.start.end [1/1] (short) (narrow) %v299_v58, 16  ;;  %v399_v0 = vadd.f32 %v3120_v53, %v398_v62  ;;  %v2969_v58 = vld [vmem:[#allocation8 + $0x18] sm:$0xff]  ;;  %v2971_v62 = vld [vmem:[#allocation8 + $0x28] sm:$0xff] }
 0x14f   :  { %3327 = vmatprep.subr.mxu1 %v404_v61  ;;  %v3404_v60 = vpack.c.bf16 %v2969_v58, %v2967_v57 }
 0x150   :  { %3322 = vmatprep.subr.mxu0 %v399_v0  ;;  %v3296_v1 = vpop.f32.mrb[20].mxu1 }
 0x151   :  { %v414_v2 = vadd.f32 %v3296_v1, %v3120_v53  ;;  %v408_v3 = vpop.f32.mrb[21].mxu1 }
 0x152   :  { %2163 = vxpose.xlu1.b32.start.end [1/1] (short) (narrow) %v304_v63, 16  ;;  %v409_v4 = vadd.f32 %v3120_v53, %v408_v3  ;;  %v2973_v63 = vld [vmem:[#allocation8 + $0x38] sm:$0xff]  ;;  %v2972_v3 = vld [vmem:[#allocation8 + $0x30] sm:$0xff] }
 0x153   :  { %v3408_v1 = vpack.c.bf16 %v2973_v63, %v2971_v62 }
 0x154   :  { %v3299_v5 = vpop.f32.mrb[22].mxu1 }
 0x155   :  { %v424_v6 = vadd.f32 %v3299_v5, %v3120_v53  ;;  %v418_v7 = vpop.f32.mrb[23].mxu1  ;;  %v2977_v5 = vld [vmem:[#allocation8 + $0x58] sm:$0xff] }
 0x156   :  { %v419_v8 = vadd.f32 %v3120_v53, %v418_v7 }
 0x158   :  { %v3302_v9 = vpop.f32.mrb[24].mxu1 }
 0x159   :  { %v3823_v10 = vadd.f32 %v3302_v9, %v3120_v53  ;;  %v428_v11 = vpop.f32.mrb[25].mxu1  ;;  %v2976_v9 = vld [vmem:[#allocation8 + $0x50] sm:$0xff] }
 0x15a   :  { %v429_v12 = vadd.f32 %v3120_v53, %v428_v11  ;;  %v2981_v11 = vld [vmem:[#allocation8 + $0x78] sm:$0xff] }
 0x15c   :  { %v3305_v13 = vpop.f32.mrb[26].mxu1 }
 0x15d   :  { %v3825_v14 = vadd.f32 %v3305_v13, %v3120_v53  ;;  %v438_v15 = vpop.f32.mrb[27].mxu1 }
 0x15e   :  { %v3827_v16 = vadd.f32 %v3120_v53, %v438_v15  ;;  %v2980_v15 = vld [vmem:[#allocation8 + $0x70] sm:$0xff] }
 0x160   :  { %v3308_v17 = vpop.f32.mrb[28].mxu1 }
 0x161   :  { %v3829_v18 = vadd.f32 %v3308_v17, %v3120_v53  ;;  %v448_v19 = vpop.f32.mrb[29].mxu1  ;;  %v2985_v17 = vld [vmem:[#allocation8 + $0x98] sm:$0xff] }
 0x162   :  { %v3831_v20 = vadd.f32 %v3120_v53, %v448_v19 }
 0x164   :  { %v3311_v21 = vpop.f32.mrb[30].mxu1 }
 0x165   :  { %v3833_v22 = vadd.f32 %v3311_v21, %v3120_v53  ;;  %v458_v23 = vpop.f32.mrb[31].mxu1  ;;  %v2984_v21 = vld [vmem:[#allocation8 + $0x90] sm:$0xff] }
 0x166   :  { %v3835_v24 = vadd.f32 %v3120_v53, %v458_v23  ;;  %v2989_v23 = vld [vmem:[#allocation8 + $0xb8] sm:$0xff] }
 0x1ab   :  { %v597_v25 = vpop.trf.xlu0 }
 0x1ac   :  { %3319 = vmatprep.mubr.msk.f32.mxu1 %vm499_vm2, %v597_v25 }
 0x1af   :  { %v598_v26 = vpop.trf.xlu0  ;;  %v823_v27 = vpop.trf.xlu1 }
 0x1b0   :  { %3320 = vmatmul.mubr.msk.f32.vlgmr.msra.gmra.mrb[32].mxu1 %vm499_vm2, %v598_v26  ;;  %v2986_v26 = vld [vmem:[#allocation8 + $0xa0] sm:$0xff] }
 0x1b1   :  { %3329 = vmatprep.mubr.msk.f32.mxu1 %vm499_vm2, %v823_v27  ;;  %3328 = vmatpush3.msra.mxu1 %v404_v61  ;;  %v2968_v61 = vld [vmem:[#allocation8 + $0x10] sm:$0xff] }
 0x1b2   :  { %3337 = vmatprep.subr.mxu1 %v414_v2  ;;  %v2988_v27 = vld [vmem:[#allocation8 + $0xb0] sm:$0xff] }
 0x1b3   :  { %v824_v28 = vpop.trf.xlu1  ;;  %v483_v29 = vpop.trf.xlu0 }
 0x1b4   :  { %3330 = vmatmul.mubr.msk.f32.vlgmr.msra.gmra.mrb[34].mxu1 %vm499_vm2, %v824_v28  ;;  %3314 = vmatprep.mubr.msk.f32.mxu0 %vm499_vm2, %v483_v29 }
 0x1b5   :  { %3338 = vmatpush3.msra.mxu1 %v414_v2  ;;  %v2970_v2 = vld [vmem:[#allocation8 + $0x20] sm:$0xff] }
 0x1b6   :  { %3347 = vmatprep.subr.mxu1 %v424_v6 }
 0x1b7   :  { %v710_v30 = vpop.trf.xlu1  ;;  %v484_v31 = vpop.trf.xlu0 }
 0x1b8   :  { %3315 = vmatmul.mubr.msk.f32.vlgmr.msra.gmra.mrb[0].mxu0 %vm499_vm2, %v484_v31  ;;  %v3650_v31 = vmov 1983009808  }
 0x1b9   :  { %3324 = vmatprep.mubr.msk.f32.mxu0 %vm499_vm2, %v710_v30  ;;  %3323 = vmatpush3.msra.mxu0 %v399_v0  ;;  %v3406_v0 = vpack.c.bf16 %v2968_v61, %v2966_v59  ;;  %v3426_v30 = vpack.c.bf16 %v2988_v27, %v2986_v26 }
 0x1ba   :  { %3332 = vmatprep.subr.mxu0 %v409_v4 }
 0x1bb   :  { %v711_v32 = vpop.trf.xlu1  ;;  %v936_v33 = vpop.trf.xlu0 }
 0x1bc   :  { %3325 = vmatmul.mubr.msk.f32.vlgmr.msra.gmra.mrb[2].mxu0 %vm499_vm2, %v711_v32  ;;  %v2279_v32 = vunpack.c.l.s4 %v3650_v31 }
 0x1bd   :  { %3334 = vmatprep.mubr.msk.f32.mxu0 %vm499_vm2, %v936_v33  ;;  %3333 = vmatpush3.msra.mxu0 %v409_v4  ;;  %v2975_v4 = vld [vmem:[#allocation8 + $0x48] sm:$0xff]  ;;  %v2281_v33 = vlaneseq }
 0x1be   :  { %3342 = vmatprep.subr.mxu0 %v419_v8  ;;  %v3412_v7 = vpack.c.bf16 %v2977_v5, %v2975_v4 }
 0x1bf   :  { %v1049_v34 = vpop.trf.xlu1  ;;  %v937_v35 = vpop.trf.xlu0 }
 0x1c0   :  { %3339 = vmatprep.mubr.msk.f32.mxu1 %vm499_vm2, %v1049_v34  ;;  %3335 = vmatmul.mubr.msk.f32.vlgmr.msra.gmra.mrb[4].mxu0 %vm499_vm2, %v937_v35 }
 0x1c1   :  { %3343 = vmatpush3.msra.mxu0 %v419_v8  ;;  %v2974_v8 = vld [vmem:[#allocation8 + $0x40] sm:$0xff] }
 0x1c2   :  { %3352 = vmatprep.subr.mxu0 %v429_v12 }
 0x1c3   :  { %v1050_v36 = vpop.trf.xlu1  ;;  %v1162_v37 = vpop.trf.xlu0 }
 0x1c4   :  { %3340 = vmatmul.mubr.msk.f32.vlgmr.msra.gmra.mrb[36].mxu1 %vm499_vm2, %v1050_v36  ;;  %3344 = vmatprep.mubr.msk.f32.mxu0 %vm499_vm2, %v1162_v37 }
 0x1c5   :  { %3348 = vmatpush3.msra.mxu1 %v424_v6  ;;  %v3410_v6 = vpack.c.bf16 %v2972_v3, %v2970_v2 }
 0x1c6   :  { %3357 = vmatprep.subr.mxu1 %v3823_v10 }
 0x1c7   :  { %v1275_v38 = vpop.trf.xlu1  ;;  %v1163_v39 = vpop.trf.xlu0 }
 0x1c8   :  { %3345 = vmatmul.mubr.msk.f32.vlgmr.msra.gmra.mrb[6].mxu0 %vm499_vm2, %v1163_v39  ;;  %3349 = vmatprep.mubr.msk.f32.mxu1 %vm499_vm2, %v1275_v38 }
 0x1c9   :  { %3353 = vmatpush3.msra.mxu0 %v429_v12  ;;  %v3414_v12 = vpack.c.bf16 %v2976_v9, %v2974_v8 }
 0x1ca   :  { %3362 = vmatprep.subr.mxu0 %v3827_v16 }
 0x1cb   :  { %v1276_v40 = vpop.trf.xlu1  ;;  %v1388_v41 = vpop.trf.xlu0 }
 0x1cc   :  { %3350 = vmatmul.mubr.msk.f32.vlgmr.msra.gmra.mrb[38].mxu1 %vm499_vm2, %v1276_v40  ;;  %3354 = vmatprep.mubr.msk.f32.mxu0 %vm499_vm2, %v1388_v41  ;;  %v2280_v40 = vunpack.c.0.s8 %v2279_v32  ;;  %v2282_v41 = vshrl.u32 %v2281_v33, 7 }
 0x1cd   :  { %3358 = vmatpush3.msra.mxu1 %v3823_v10  ;;  %v2979_v10 = vld [vmem:[#allocation8 + $0x68] sm:$0xff] }
 0x1ce   :  { %3367 = vmatprep.subr.mxu1 %v3825_v14  ;;  %v3416_v13 = vpack.c.bf16 %v2981_v11, %v2979_v10 }
 0x1cf   :  { %v1501_v42 = vpop.trf.xlu1  ;;  %v1389_v43 = vpop.trf.xlu0 }
 0x1d0   :  { %3359 = vmatprep.mubr.msk.f32.mxu1 %vm499_vm2, %v1501_v42  ;;  %3355 = vmatmul.mubr.msk.f32.vlgmr.msra.gmra.mrb[8].mxu0 %vm499_vm2, %v1389_v43 }
 0x1d1   :  { %3363 = vmatpush3.msra.mxu0 %v3827_v16  ;;  %v2983_v16 = vld [vmem:[#allocation8 + $0x88] sm:$0xff] }
 0x1d2   :  { %3372 = vmatprep.subr.mxu0 %v3831_v20  ;;  %v3420_v19 = vpack.c.bf16 %v2985_v17, %v2983_v16 }
 0x1d3   :  { %v1502_v44 = vpop.trf.xlu1  ;;  %v1614_v45 = vpop.trf.xlu0 }
 0x1d4   :  { %3360 = vmatmul.mubr.msk.f32.vlgmr.msra.gmra.mrb[40].mxu1 %vm499_vm2, %v1502_v44  ;;  %3364 = vmatprep.mubr.msk.f32.mxu0 %vm499_vm2, %v1614_v45  ;;  %v3883_v44 = vsub.s32 %v2280_v40, %v2282_v41 }
 0x1d5   :  { %3368 = vmatpush3.msra.mxu1 %v3825_v14  ;;  %v2978_v14 = vld [vmem:[#allocation8 + $0x60] sm:$0xff] }
 0x1d6   :  { %3377 = vmatprep.subr.mxu1 %v3829_v18 }
 0x1d7   :  { %v1727_v46 = vpop.trf.xlu1  ;;  %v1615_v47 = vpop.trf.xlu0 }
 0x1d8   :  { %3365 = vmatmul.mubr.msk.f32.vlgmr.msra.gmra.mrb[10].mxu0 %vm499_vm2, %v1615_v47  ;;  %3369 = vmatprep.mubr.msk.f32.mxu1 %vm499_vm2, %v1727_v46 }
 0x1d9   :  { %3373 = vmatpush3.msra.mxu0 %v3831_v20  ;;  %v2982_v20 = vld [vmem:[#allocation8 + $0x80] sm:$0xff] }
 0x1da   :  { %3382 = vmatprep.subr.mxu0 %v3835_v24 }
 0x1db   :  { %v1728_v48 = vpop.trf.xlu1  ;;  %v1840_v49 = vpop.trf.xlu0 }
 0x1dc   :  { %3370 = vmatmul.mubr.msk.f32.vlgmr.msra.gmra.mrb[42].mxu1 %vm499_vm2, %v1728_v48  ;;  %3374 = vmatprep.mubr.msk.f32.mxu0 %vm499_vm2, %v1840_v49  ;;  %v3651_v49 = vmov 1934713408  }
 0x1dd   :  { %3378 = vmatpush3.msra.mxu1 %v3829_v18  ;;  %v3418_v18 = vpack.c.bf16 %v2980_v15, %v2978_v14 }
 0x1de   :  { %3387 = vmatprep.subr.mxu1 %v3833_v22 }
 0x1df   :  { %v1953_v50 = vpop.trf.xlu1  ;;  %v1841_v51 = vpop.trf.xlu0 }
 0x1e0   :  { %3379 = vmatprep.mubr.msk.f32.mxu1 %vm499_vm2, %v1953_v50  ;;  %3375 = vmatmul.mubr.msk.f32.vlgmr.msra.gmra.mrb[12].mxu0 %vm499_vm2, %v1841_v51  ;;  %v2343_v50 = vunpack.c.l.s4 %v3651_v49 }
 0x1e1   :  { %3383 = vmatpush3.msra.mxu0 %v3835_v24  ;;  %v3422_v24 = vpack.c.bf16 %v2984_v21, %v2982_v20 }
 0x1e2   :  { %3405 = vmatprep.subr.bf16.mxu0 %v3404_v60 }
 0x1e3   :  { %v1954_v52 = vpop.trf.xlu1  ;;  %v2066_v53 = vpop.trf.xlu0 }
 0x1e4   :  { %3380 = vmatmul.mubr.msk.f32.vlgmr.msra.gmra.mrb[44].mxu1 %vm499_vm2, %v1954_v52  ;;  %3384 = vmatprep.mubr.msk.f32.mxu0 %vm499_vm2, %v2066_v53 }
 0x1e5   :  { %3388 = vmatpush3.msra.mxu1 %v3833_v22  ;;  %v2987_v22 = vld [vmem:[#allocation8 + $0xa8] sm:$0xff] }
 0x1e6   :  { %v3424_v25 = vpack.c.bf16 %v2989_v23, %v2987_v22 }
 0x1e7   :  { %v2179_v54 = vpop.trf.xlu1  ;;  %v2067_v55 = vpop.trf.xlu0 }
 0x1e8   :  { %3385 = vmatmul.mubr.msk.f32.vlgmr.msra.gmra.mrb[14].mxu0 %vm499_vm2, %v2067_v55  ;;  %3389 = vmatprep.mubr.msk.f32.mxu1 %vm499_vm2, %v2179_v54 }
 0x1e9   :  { %3407 = vmatpush1.bf16.xpose.msra.mxu0 %v3406_v0 }
 0x1ea   :  { %3409 = vmatprep.subr.bf16.mxu0 %v3408_v1 }
 0x1eb   :  { %v2180_v56 = vpop.trf.xlu1 }
 0x1ec   :  { %3390 = vmatmul.mubr.msk.f32.vlgmr.msra.gmra.mrb[46].mxu1 %vm499_vm2, %v2180_v56 }
 0x1f1   :  { %3411 = vmatpush1.bf16.xpose.msra.mxu0 %v3410_v6 }
 0x1f2   :  { %3413 = vmatprep.subr.bf16.mxu0 %v3412_v7  ;;  %v2344_v7 = vunpack.c.0.s8 %v2343_v50 }
 0x1f4   :  { %v3893_v10 = vsub.s32 %v2344_v7, %v2282_v41 }
 0x1f9   :  { %3415 = vmatpush1.bf16.xpose.msra.mxu0 %v3414_v12 }
 0x1fa   :  { %3417 = vmatprep.subr.bf16.mxu0 %v3416_v13 }
 0x201   :  { %3419 = vmatpush1.bf16.xpose.msra.mxu0 %v3418_v18 }
 0x202   :  { %3421 = vmatprep.subr.bf16.mxu0 %v3420_v19 }
 0x209   :  { %3423 = vmatpush1.bf16.xpose.msra.mxu0 %v3422_v24 }
 0x20a   :  { %3425 = vmatprep.subr.bf16.mxu0 %v3424_v25 }
 0x211   :  { %3427 = vmatpush1.bf16.xpose.msra.mxu0 %v3426_v30 }
 0x283   :  { %v3321_v28 = vpop.f32.mrb[32].mxu1 }
 0x284   :  { %v685_v29 = vpop.f32.mrb[33].mxu1 }
 0x287   :  { %v3331_v34 = vpop.f32.mrb[34].mxu1 }
 0x288   :  { %v2564_v35 = vcombine.low %v3321_v28, %v3331_v34  ;;  %v2565_v36 = vcombine.high %v3321_v28, %v3331_v34  ;;  %v911_v37 = vpop.f32.mrb[35].mxu1 }
 0x289   :  { %v2292_v38 = vcombine.low %v685_v29, %v911_v37  ;;  %v2293_v39 = vcombine.high %v685_v29, %v911_v37  ;;  %v2993_v37 = vld [vmem:[#allocation8 + $0xd8] sm:$0xff] }
 0x28a   :  { %v2572_v53 = vrot.slane %v2564_v35, %v3883_v44  ;;  %v2579_v54 = vrot.slane %v2565_v36, %v3883_v44  ;;  %v2991_v36 = vld [vmem:[#allocation8 + $0xc8] sm:$0xff] }
 0x28b   :  { %v3316_v42 = vpop.f32.mrb[0].mxu0  ;;  %v2300_v57 = vrot.slane %v2292_v38, %v3883_v44  ;;  %v2307_v58 = vrot.slane %v2293_v39, %v3883_v44 }
 0x28c   :  { %v572_v43 = vpop.f32.mrb[1].mxu0 }
 0x28f   :  { %v3326_v45 = vpop.f32.mrb[2].mxu0 }
 0x290   :  { %v2548_v46 = vcombine.low %v3316_v42, %v3326_v45  ;;  %v2549_v47 = vcombine.high %v3316_v42, %v3326_v45  ;;  %v798_v48 = vpop.f32.mrb[3].mxu0  ;;  %v3428_v42 = vpack.c.bf16 %v2993_v37, %v2991_v36 }
 0x291   :  { %v2276_v51 = vcombine.low %v572_v43, %v798_v48  ;;  %v2277_v52 = vcombine.high %v572_v43, %v798_v48 }
 0x292   :  { %v2556_v55 = vrot.slane %v2548_v46, %v3883_v44  ;;  %v2563_v56 = vrot.slane %v2549_v47, %v3883_v44  ;;  %3429 = vmatprep.subr.bf16.mxu0 %v3428_v42 }
 0x293   :  { %v2284_v59 = vrot.slane %v2276_v51, %v3883_v44  ;;  %v2291_v60 = vrot.slane %v2277_v52, %v3883_v44  ;;  %v3336_v61 = vpop.f32.mrb[4].mxu0 }
 0x294   :  { %v2612_v62 = vcombine.low %v2556_v55, %v2572_v53  ;;  %v2613_v63 = vcombine.high %v2556_v55, %v2572_v53  ;;  %v2628_v0 = vcombine.low %v2563_v56, %v2579_v54  ;;  %v2629_v1 = vcombine.high %v2563_v56, %v2579_v54  ;;  %v1024_v2 = vpop.f32.mrb[5].mxu0 }
 0x295   :  { %v2340_v3 = vcombine.low %v2284_v59, %v2300_v57  ;;  %v2341_v4 = vcombine.high %v2284_v59, %v2300_v57  ;;  %v2356_v5 = vcombine.low %v2291_v60, %v2307_v58  ;;  %v2357_v6 = vcombine.high %v2291_v60, %v2307_v58 }
 0x296   :  { %v2627_v17 = vrot.slane %v2613_v63, %v3893_v10  ;;  %v3897_v18 = vrot.slane %v2628_v0, %v3893_v10  ;;  %v3900_v19 = vrot.slane %v2629_v1, %v3893_v10  ;;  %v3904_v22 = vrot.slane %v2612_v62, %v3893_v10 }
 0x297   :  { %v3341_v8 = vpop.f32.mrb[36].mxu1  ;;  %v2355_v20 = vrot.slane %v2341_v4, %v3893_v10  ;;  %v2364_v23 = vrot.slane %v2356_v5, %v3893_v10  ;;  %v3908_v24 = vrot.slane %v2357_v6, %v3893_v10  ;;  %v3912_v31 = vrot.slane %v2340_v3, %v3893_v10 }
 0x298   :  { %v1137_v9 = vpop.f32.mrb[37].mxu1 }
 0x29b   :  { %v3346_v11 = vpop.f32.mrb[6].mxu0 }
 0x29c   :  { %v2580_v12 = vcombine.low %v3336_v61, %v3346_v11  ;;  %v2581_v13 = vcombine.high %v3336_v61, %v3346_v11  ;;  %v1250_v14 = vpop.f32.mrb[7].mxu0 }
 0x29d   :  { %v2308_v15 = vcombine.low %v1024_v2, %v1250_v14  ;;  %v2309_v16 = vcombine.high %v1024_v2, %v1250_v14 }
 0x29e   :  { %v2588_v28 = vrot.slane %v2580_v12, %v3883_v44  ;;  %v2595_v32 = vrot.slane %v2581_v13, %v3883_v44 }
 0x29f   :  { %v3351_v21 = vpop.f32.mrb[38].mxu1  ;;  %v2316_v33 = vrot.slane %v2308_v15, %v3883_v44  ;;  %v2323_v38 = vrot.slane %v2309_v16, %v3883_v44 }
 0x2a0   :  { %v2596_v25 = vcombine.low %v3341_v8, %v3351_v21  ;;  %v2597_v26 = vcombine.high %v3341_v8, %v3351_v21  ;;  %v1363_v27 = vpop.f32.mrb[39].mxu1 }
 0x2a1   :  { %v2324_v29 = vcombine.low %v1137_v9, %v1363_v27  ;;  %v2325_v30 = vcombine.high %v1137_v9, %v1363_v27 }
 0x2a2   :  { %v2604_v34 = vrot.slane %v2596_v25, %v3883_v44  ;;  %v2611_v35 = vrot.slane %v2597_v26, %v3883_v44 }
 0x2a3   :  { %v2332_v39 = vrot.slane %v2324_v29, %v3883_v44  ;;  %v2339_v40 = vrot.slane %v2325_v30, %v3883_v44  ;;  %v3921_v41 = vpop.f32.mrb[8].mxu0  ;;  %v2995_v30 = vld [vmem:[#allocation8 + $0xe8] sm:$0xff] }
 0x2a4   :  { %v2644_v43 = vcombine.low %v2588_v28, %v2604_v34  ;;  %v2645_v45 = vcombine.high %v2588_v28, %v2604_v34  ;;  %v2660_v46 = vcombine.low %v2595_v32, %v2611_v35  ;;  %v2661_v47 = vcombine.high %v2595_v32, %v2611_v35  ;;  %v3923_v48 = vpop.f32.mrb[9].mxu0  ;;  %v2992_v28 = vld [vmem:[#allocation8 + $0xd0] sm:$0xff]  ;;  %v2997_v32 = vld [vmem:[#allocation8 + $0xf8] sm:$0xff] }
 0x2a5   :  { %v2372_v49 = vcombine.low %v2316_v33, %v2332_v39  ;;  %v2373_v50 = vcombine.high %v2316_v33, %v2332_v39  ;;  %v2388_v51 = vcombine.low %v2323_v38, %v2339_v40  ;;  %v2389_v52 = vcombine.high %v2323_v38, %v2339_v40 }
 0x2a6   :  { %v2659_v53 = vrot.slane %v2645_v45, %v3893_v10  ;;  %v2668_v54 = vrot.slane %v2660_v46, %v3893_v10  ;;  %v2675_v55 = vrot.slane %v2661_v47, %v3893_v10  ;;  %v3929_v56 = vrot.slane %v2644_v43, %v3893_v10 }
 0x2a7   :  { %v2387_v57 = vrot.slane %v2373_v50, %v3893_v10  ;;  %v2396_v58 = vrot.slane %v2388_v51, %v3893_v10  ;;  %v2403_v59 = vrot.slane %v2389_v52, %v3893_v10  ;;  %v3361_v60 = vpop.f32.mrb[40].mxu1  ;;  %v3935_v61 = vrot.slane %v2372_v49, %v3893_v10 }
 0x2a8   :  { %v1589_v62 = vpop.f32.mrb[41].mxu1  ;;  %v2678_v63 = vcombine.low %v2627_v17, %v2659_v53  ;;  %v2676_v0 = vcombine.low %v3904_v22, %v3929_v56  ;;  %v2677_v1 = vcombine.high %v3904_v22, %v3929_v56  ;;  %v2679_v2 = vcombine.high %v2627_v17, %v2659_v53  ;;  %v2994_v53 = vld [vmem:[#allocation8 + $0xe0] sm:$0xff] }
 0x2a9   :  { %v2406_v3 = vcombine.low %v2355_v20, %v2387_v57  ;;  %v2405_v4 = vcombine.high %v3912_v31, %v3935_v61  ;;  %v2404_v5 = vcombine.low %v3912_v31, %v3935_v61  ;;  %v2407_v6 = vcombine.high %v2355_v20, %v2387_v57  ;;  %v2990_v20 = vld [vmem:[#allocation8 + $0xc0] sm:$0xff] }
 0x2aa   :  { %v2409_v7 = vcombine.high %v2364_v23, %v2396_v58  ;;  %v2681_v8 = vcombine.high %v3897_v18, %v2668_v54  ;;  %v2408_v9 = vcombine.low %v2364_v23, %v2396_v58  ;;  %v2680_v11 = vcombine.low %v3897_v18, %v2668_v54  ;;  %v2996_v54 = vld [vmem:[#allocation8 + $0xf0] sm:$0xff] }
 0x2ab   :  { %v3366_v12 = vpop.f32.mrb[10].mxu0  ;;  %v3459_v13 = vpack.i.bf16 %v2406_v3, %v2678_v63  ;;  %v3454_v14 = vpack.i.bf16 %v2405_v4, %v2677_v1  ;;  %v3464_v15 = vpack.i.bf16 %v2407_v6, %v2679_v2  ;;  %v2410_v16 = vcombine.low %v3908_v24, %v2403_v59 }
 0x2ac   :  { %v2684_v17 = vcombine.low %v3921_v41, %v3366_v12  ;;  %v2685_v21 = vcombine.high %v3921_v41, %v3366_v12  ;;  %v1702_v25 = vpop.f32.mrb[11].mxu0  ;;  %v3474_v26 = vpack.i.bf16 %v2409_v7, %v2681_v8  ;;  %v3469_v27 = vpack.i.bf16 %v2408_v9, %v2680_v11 }
 0x2ad   :  { %v2412_v29 = vcombine.low %v3923_v48, %v1702_v25  ;;  %v2413_v23 = vcombine.high %v3923_v48, %v1702_v25  ;;  %3460 = vrot.lane.b32.xlu1 %v3459_v13, %s3652_s4  ;;  %3455 = vrot.lane.b32.xlu0 %v3454_v14, %s3649_s25  ;;  %v2682_v18 = vcombine.low %v3900_v19, %v2675_v55 }
 0x2ae   :  { %v2411_v33 = vcombine.high %v3908_v24, %v2403_v59  ;;  %v2683_v34 = vcombine.high %v3900_v19, %v2675_v55  ;;  %v3430_v37 = vpack.c.bf16 %v2992_v28, %v2990_v20  ;;  %v3432_v42 = vpack.c.bf16 %v2997_v32, %v2995_v30 }
 0x2af   :  { %v3371_v35 = vpop.f32.mrb[42].mxu1  ;;  %v3479_v36 = vpack.i.bf16 %v2410_v16, %v2682_v18  ;;  %v2692_v24 = vrot.slane %v2684_v17, %v3883_v44  ;;  %v2699_v19 = vrot.slane %v2685_v21, %v3883_v44  ;;  %v2420_v48 = vrot.slane %v2412_v29, %v3883_v44 }
 0x2b0   :  { %v2700_v38 = vcombine.low %v3361_v60, %v3371_v35  ;;  %v2701_v39 = vcombine.high %v3361_v60, %v3371_v35  ;;  %v1815_v40 = vpop.f32.mrb[43].mxu1  ;;  %v3484_v41 = vpack.i.bf16 %v2411_v33, %v2683_v34  ;;  %3431 = vmatpush1.bf16.xpose.msra.mxu0 %v3430_v37  ;;  %v2427_v49 = vrot.slane %v2413_v23, %v3883_v44 }
 0x2b1   :  { %v2428_v43 = vcombine.low %v1589_v62, %v1815_v40  ;;  %v2429_v45 = vcombine.high %v1589_v62, %v1815_v40  ;;  %3465 = vrot.lane.b32.xlu1 %v3464_v15, %s3653_s8  ;;  %3475 = vrot.lane.b32.xlu0 %v3474_v26, %s3654_s9  ;;  %v3434_v3 = vpack.c.bf16 %v2996_v54, %v2994_v53 }
 0x2b2   :  { %v2708_v46 = vrot.slane %v2700_v38, %v3883_v44  ;;  %v2715_v47 = vrot.slane %v2701_v39, %v3883_v44  ;;  %3433 = vmatprep.subr.bf16.mxu0 %v3432_v42 }
 0x2b3   :  { %v2436_v50 = vrot.slane %v2428_v43, %v3883_v44  ;;  %v2443_v51 = vrot.slane %v2429_v45, %v3883_v44  ;;  %v3376_v52 = vpop.f32.mrb[12].mxu0 }
 0x2b4   :  { %v2748_v55 = vcombine.low %v2692_v24, %v2708_v46  ;;  %v2749_v57 = vcombine.high %v2692_v24, %v2708_v46  ;;  %v2764_v58 = vcombine.low %v2699_v19, %v2715_v47  ;;  %v2765_v59 = vcombine.high %v2699_v19, %v2715_v47  ;;  %v1928_v60 = vpop.f32.mrb[13].mxu0 }
 0x2b5   :  { %v2476_v62 = vcombine.low %v2420_v48, %v2436_v50  ;;  %v2477_v63 = vcombine.high %v2420_v48, %v2436_v50  ;;  %v2492_v1 = vcombine.low %v2427_v49, %v2443_v51  ;;  %v2493_v2 = vcombine.high %v2427_v49, %v2443_v51  ;;  %3470 = vrot.lane.b32.xlu1 %v3469_v27, %s3655_s10 }
 0x2b6   :  { %3480 = vrot.lane.b32.xlu0 %v3479_v36, %s3656_s11  ;;  %v2763_v14 = vrot.slane %v2749_v57, %v3893_v10  ;;  %v2772_v15 = vrot.slane %v2764_v58, %v3893_v10  ;;  %v2779_v16 = vrot.slane %v2765_v59, %v3893_v10  ;;  %v3974_v21 = vrot.slane %v2748_v55, %v3893_v10 }
 0x2b7   :  { %v3381_v4 = vpop.f32.mrb[44].mxu1  ;;  %v2491_v25 = vrot.slane %v2477_v63, %v3893_v10  ;;  %v2500_v26 = vrot.slane %v2492_v1, %v3893_v10  ;;  %v2507_v29 = vrot.slane %v2493_v2, %v3893_v10  ;;  %v3980_v30 = vrot.slane %v2476_v62, %v3893_v10 }
 0x2b8   :  { %v2041_v6 = vpop.f32.mrb[45].mxu1  ;;  %3435 = vmatpush1.bf16.xpose.msra.mxu0 %v3434_v3 }
 0x2ba   :  { %3485 = vrot.lane.b32.xlu0 %v3484_v41, %s3657_s12 }
 0x2bb   :  { %v3386_v7 = vpop.f32.mrb[14].mxu0 }
 0x2bc   :  { %v2716_v8 = vcombine.low %v3376_v52, %v3386_v7  ;;  %v2717_v9 = vcombine.high %v3376_v52, %v3386_v7  ;;  %v2154_v11 = vpop.f32.mrb[15].mxu0 }
 0x2bd   :  { %v2444_v12 = vcombine.low %v1928_v60, %v2154_v11  ;;  %v2445_v13 = vcombine.high %v1928_v60, %v2154_v11 }
 0x2be   :  { %v2724_v32 = vrot.slane %v2716_v8, %v3883_v44  ;;  %v2731_v33 = vrot.slane %v2717_v9, %v3883_v44 }
 0x2bf   :  { %v3391_v17 = vpop.f32.mrb[46].mxu1  ;;  %v2452_v36 = vrot.slane %v2444_v12, %v3883_v44  ;;  %v2459_v37 = vrot.slane %v2445_v13, %v3883_v44 }
 0x2c0   :  { %v2732_v27 = vcombine.low %v3381_v4, %v3391_v17  ;;  %v2733_v20 = vcombine.high %v3381_v4, %v3391_v17  ;;  %v2267_v28 = vpop.f32.mrb[47].mxu1 }
 0x2c1   :  { %v2460_v23 = vcombine.low %v2041_v6, %v2267_v28  ;;  %v2461_v18 = vcombine.high %v2041_v6, %v2267_v28 }
 0x2c2   :  { %v2740_v34 = vrot.slane %v2732_v27, %v3883_v44  ;;  %v2747_v35 = vrot.slane %v2733_v20, %v3883_v44 }
 0x2c3   :  { %v2468_v38 = vrot.slane %v2460_v23, %v3883_v44  ;;  %v2475_v39 = vrot.slane %v2461_v18, %v3883_v44 }
 0x2c4   :  { %v2780_v40 = vcombine.low %v2724_v32, %v2740_v34  ;;  %v2781_v41 = vcombine.high %v2724_v32, %v2740_v34  ;;  %v2796_v42 = vcombine.low %v2731_v33, %v2747_v35  ;;  %v2797_v43 = vcombine.high %v2731_v33, %v2747_v35 }
 0x2c5   :  { %v2508_v45 = vcombine.low %v2452_v36, %v2468_v38  ;;  %v2509_v24 = vcombine.high %v2452_v36, %v2468_v38  ;;  %v2524_v19 = vcombine.low %v2459_v37, %v2475_v39  ;;  %v2525_v46 = vcombine.high %v2459_v37, %v2475_v39 }
 0x2c6   :  { %v2795_v47 = vrot.slane %v2781_v41, %v3893_v10  ;;  %v2804_v48 = vrot.slane %v2796_v42, %v3893_v10  ;;  %v2811_v49 = vrot.slane %v2797_v43, %v3893_v10  ;;  %v3994_v50 = vrot.slane %v2780_v40, %v3893_v10 }
 0x2c7   :  { %v2523_v51 = vrot.slane %v2509_v24, %v3893_v10  ;;  %v2532_v44 = vrot.slane %v2524_v19, %v3893_v10  ;;  %v2539_v52 = vrot.slane %v2525_v46, %v3893_v10  ;;  %v4000_v53 = vrot.slane %v2508_v45, %v3893_v10 }
 0x2c8   :  { %v2817_v54 = vcombine.high %v2772_v15, %v2804_v48  ;;  %v2812_v55 = vcombine.low %v3974_v21, %v3994_v50  ;;  %v2813_v57 = vcombine.high %v3974_v21, %v3994_v50  ;;  %v2819_v58 = vcombine.high %v2779_v16, %v2811_v49 }
 0x2c9   :  { %v2545_v59 = vcombine.high %v2500_v26, %v2532_v44  ;;  %v2541_v60 = vcombine.high %v3980_v30, %v4000_v53  ;;  %v2540_v62 = vcombine.low %v3980_v30, %v4000_v53  ;;  %v2547_v63 = vcombine.high %v2507_v29, %v2539_v52 }
 0x2ca   :  { %v2542_v1 = vcombine.low %v2491_v25, %v2523_v51  ;;  %v2814_v2 = vcombine.low %v2763_v14, %v2795_v47  ;;  %v2543_v10 = vcombine.high %v2491_v25, %v2523_v51  ;;  %v2815_v3 = vcombine.high %v2763_v14, %v2795_v47 }
 0x2cb   :  { %v3509_v4 = vpack.i.bf16 %v2545_v59, %v2817_v54  ;;  %v3489_v6 = vpack.i.bf16 %v2541_v60, %v2813_v57  ;;  %v3519_v7 = vpack.i.bf16 %v2547_v63, %v2819_v58  ;;  %v2544_v8 = vcombine.low %v2500_v26, %v2532_v44 }
 0x2cc   :  { %v3494_v9 = vpack.i.bf16 %v2542_v1, %v2814_v2  ;;  %v3499_v11 = vpack.i.bf16 %v2543_v10, %v2815_v3  ;;  %v2816_v12 = vcombine.low %v2772_v15, %v2804_v48  ;;  %v2546_v13 = vcombine.low %v2507_v29, %v2539_v52 }
 0x2cd   :  { %3510 = vrot.lane.b32.xlu0 %v3509_v4, %s3654_s9  ;;  %3490 = vrot.lane.b32.xlu1 %v3489_v6, %s3649_s25  ;;  %v2818_v17 = vcombine.low %v2779_v16, %v2811_v49 }
 0x2ce   :  { %v3504_v27 = vpack.i.bf16 %v2544_v8, %v2816_v12 }
 0x2cf   :  { %v3514_v20 = vpack.i.bf16 %v2546_v13, %v2818_v17 }
 0x2d1   :  { %3520 = vrot.lane.b32.xlu0 %v3519_v7, %s3657_s12  ;;  %3495 = vrot.lane.b32.xlu1 %v3494_v9, %s3652_s4 }
 0x2d5   :  { %3500 = vrot.lane.b32.xlu1 %v3499_v11, %s3653_s8 }
 0x2d9   :  { %3505 = vrot.lane.b32.xlu1 %v3504_v27, %s3655_s10 }
 0x2dd   :  { %3515 = vrot.lane.b32.xlu1 %v3514_v20, %s3656_s11 }
 0x31f   :  { %v3461_v14 = vpop.permute.xlu1 %3460  ;;  %v3456_v15 = vpop.permute.xlu0 %3455 }
 0x320   :  { %v3458_v25 = vunpack.i.h.bf16 %v3456_v15  ;;  %v3457_v26 = vunpack.i.l.bf16 %v3456_v15  ;;  %v3463_v16 = vunpack.i.h.bf16 %v3461_v14  ;;  %v3462_v23 = vunpack.i.l.bf16 %v3461_v14 }
 0x322   :  { %v2933_v18 = vsel %vm2932_vm3, %v2404_v5, %v3458_v25  ;;  %v2952_v32 = vsel %vm2932_vm3, %v2676_v0, %v3457_v26 }
 0x323   :  { %v3466_v28 = vpop.permute.xlu1 %3465  ;;  %v3476_v29 = vpop.permute.xlu0 %3475  ;;  %v2935_v36 = vsel %vm107_vm0, %v2933_v18, %v3463_v16  ;;  %v2954_v37 = vsel %vm107_vm0, %v2952_v32, %v3462_v23  ;;  %v3171_v16 = vld [vmem:[%s4081_s6] ss:$0 sm:$0xff] }
 0x324   :  { %v3468_v33 = vunpack.i.h.bf16 %v3466_v28  ;;  %v3467_v34 = vunpack.i.l.bf16 %v3466_v28  ;;  %v3478_v56 = vunpack.i.h.bf16 %v3476_v29  ;;  %v3477_v0 = vunpack.i.l.bf16 %v3476_v29 }
 0x326   :  { %v2938_v5 = vsel %vm2937_vm4, %v2935_v36, %v3468_v33  ;;  %v2956_v22 = vsel %vm2937_vm4, %v2954_v37, %v3467_v34 }
 0x327   :  { %v3471_v35 = vpop.permute.xlu1 %3470 }
 0x328   :  { %v3473_v38 = vunpack.i.h.bf16 %v3471_v35  ;;  %v3472_v31 = vunpack.i.l.bf16 %v3471_v35  ;;  %v3481_v61 = vpop.permute.xlu0 %3480 }
 0x329   :  { %v3483_v41 = vunpack.i.h.bf16 %v3481_v61  ;;  %v3482_v42 = vunpack.i.l.bf16 %v3481_v61 }
 0x32a   :  { %v2941_v39 = vsel %vm2940_vm5, %v2938_v5, %v3473_v38  ;;  %v2958_v40 = vsel %vm2940_vm5, %v2956_v22, %v3472_v31 }
 0x32b   :  { %v2960_v43 = vsel %vm2943_vm6, %v2958_v40, %v3477_v0  ;;  %v2944_v45 = vsel %vm2943_vm6, %v2941_v39, %v3478_v56 }
 0x32c   :  { %v3486_v24 = vpop.permute.xlu0 %3485  ;;  %v2962_v19 = vsel %vm2946_vm7, %v2960_v43, %v3482_v42  ;;  %v2947_v46 = vsel %vm2946_vm7, %v2944_v45, %v3483_v41 }
 0x32d   :  { %v3488_v47 = vunpack.i.h.bf16 %v3486_v24  ;;  %v3487_v48 = vunpack.i.l.bf16 %v3486_v24 }
 0x32f   :  { %v2964_v49 = vsel %vm2949_vm8, %v2962_v19, %v3487_v48  ;;  %v2950_v51 = vsel %vm2949_vm8, %v2947_v46, %v3488_v47 }
 0x330   :  { %3069 = vmatprep.mubr.f32.mxu0 %v2964_v49 }
 0x331   :  { %3070 = vmatmul.mubr.f32.vlgmr.msra.gmra.mrb[16].mxu0 %v2950_v51 }
 0x33f   :  { %v3491_v44 = vpop.permute.xlu1 %3490  ;;  %v3511_v59 = vpop.permute.xlu0 %3510 }
 0x340   :  { %v3493_v54 = vunpack.i.h.bf16 %v3491_v44  ;;  %v3492_v57 = vunpack.i.l.bf16 %v3491_v44  ;;  %v3512_v21 = vunpack.i.l.bf16 %v3511_v59 }
 0x342   :  { %v2934_v10 = vsel %vm2932_vm3, %v2540_v62, %v3493_v54  ;;  %v2953_v3 = vsel %vm2932_vm3, %v2812_v55, %v3492_v57  ;;  %v3513_v62 = vunpack.i.h.bf16 %v3511_v59 }
 0x343   :  { %v3496_v52 = vpop.permute.xlu1 %3495  ;;  %v3521_v13 = vpop.permute.xlu0 %3520 }
 0x344   :  { %v3498_v60 = vunpack.i.h.bf16 %v3496_v52  ;;  %v3497_v63 = vunpack.i.l.bf16 %v3496_v52  ;;  %v3523_v27 = vunpack.i.h.bf16 %v3521_v13  ;;  %v3522_v20 = vunpack.i.l.bf16 %v3521_v13 }
 0x346   :  { %v2936_v6 = vsel %vm107_vm0, %v2934_v10, %v3498_v60  ;;  %v2955_v7 = vsel %vm107_vm0, %v2953_v3, %v3497_v63 }
 0x347   :  { %v3501_v58 = vpop.permute.xlu1 %3500 }
 0x348   :  { %v3503_v1 = vunpack.i.h.bf16 %v3501_v58  ;;  %v3502_v2 = vunpack.i.l.bf16 %v3501_v58 }
 0x34a   :  { %v2939_v11 = vsel %vm2937_vm4, %v2936_v6, %v3503_v1  ;;  %v2957_v12 = vsel %vm2937_vm4, %v2955_v7, %v3502_v2 }
 0x34b   :  { %v3506_v4 = vpop.permute.xlu1 %3505 }
 0x34c   :  { %v3508_v8 = vunpack.i.h.bf16 %v3506_v4  ;;  %v3507_v9 = vunpack.i.l.bf16 %v3506_v4 }
 0x34e   :  { %v2942_v30 = vsel %vm2940_vm5, %v2939_v11, %v3508_v8  ;;  %v2959_v53 = vsel %vm2940_vm5, %v2957_v12, %v3507_v9 }
 0x34f   :  { %v3516_v50 = vpop.permute.xlu1 %3515  ;;  %v2961_v14 = vsel %vm2943_vm6, %v2959_v53, %v3512_v21  ;;  %v2945_v15 = vsel %vm2943_vm6, %v2942_v30, %v3513_v62 }
 0x350   :  { %v3518_v55 = vunpack.i.h.bf16 %v3516_v50  ;;  %v3517_v17 = vunpack.i.l.bf16 %v3516_v50 }
 0x352   :  { %v2963_v25 = vsel %vm2946_vm7, %v2961_v14, %v3517_v17  ;;  %v2948_v26 = vsel %vm2946_vm7, %v2945_v15, %v3518_v55 }
 0x353   :  { %v2965_v28 = vsel %vm2949_vm8, %v2963_v25, %v3522_v20  ;;  %v2951_v29 = vsel %vm2949_vm8, %v2948_v26, %v3523_v27 }
 0x354   :  { %3074 = vmatprep.mubr.f32.mxu0 %v2965_v28 }
 0x355   :  { %3075 = vmatmul.mubr.f32.gmra.mrb[18].mxu0 %v2951_v29 }
 0x404   :  { %v3071_v23 = vpop.f32.mrb[16].mxu0 }
 0x405   :  { %v3072_v18 = vadd.f32 %v3171_v16, %v3071_v23  ;;  %v3073_v32 = vpop.f32.mrb[17].mxu0 }
 0x407   :  { %3080 = vst [vmem:[#allocation10] sm:$0xff] %v3072_v18 }
 0x428   :  { %v3076_v33 = vpop.f32.mrb[18].mxu0 }
 0x429   :  { %v3077_v34 = vadd.f32 %v3171_v16, %v3076_v33  ;;  %v3078_v35 = vpop.f32.mrb[19].mxu0 }
 0x42b   :  { %3081 = vst [vmem:[#allocation10 + $0x8] sm:$0xff] %v3077_v34 }
 0x42c   :  { %3623 = shalt.err (!%p3620_p8)
}
 0x42d   :  { %s3624_s19 = scalar_lea.hbm %s4082_s7, 256 }
 0x42e   :  { %p3625_p9 = scmp.ne.s32.totalorder %s4082_s7, %s3624_s19  ;;  %p3628_p10 = scmp.lt.u32.totalorder %s3624_s19, %s4082_s7 }
 0x430   :  { %p3630_p11 = pnand %p3628_p10, %p3625_p9 }
 0x432   :  { %3633 = shalt.err (!%p3630_p11)
}
 0x433   :  { %3093 = dma.vmem_to_hbm [thread:$0]  %s3088_s27, 256, %s4082_s7, [#allocation4], %s3644_s13, %s3644_s13, %s3645_s14  }
 0x434   :  { %3640 = dma.done.wait [#allocation4], 256  }
 0x435   :  { %3641 = vsyncadd [#allocation4], 4294967040 }
 0x436   :  { %3097 = vsyncpa [#allocation3], 1 }
 0x437   :  { %3098 = vsyncpa [#allocation6], 1 }
 0x438   :  { %3099 = vsyncpa [#allocation9], 1 }
 0x439   :  { %3100 = vsyncpa [#allocation4], 1 }

// kernel: tpu_custom_call.1
= control target key start
LH: loop header
LB: loop body
LE: loop exit
PB: predicated region body
PF: predicated region fallthrough
CT: control target
= control target key end

     0   :  { %12 = vsyncpa [#allocation3], 0  ;;  %s4075_s0 = inlined_call_operand.hbm [shape: f32[16,8,32], index: 0, kind: input, shape index: {}]   ;;  %s4076_s1 = inlined_call_operand.hbm [shape: f32[16,32], index: 1, kind: input, shape index: {}]   ;;  %s4077_s2 = inlined_call_operand.vmem [shape: f32[1,16], index: 2, kind: input, shape index: {}]   ;;  %s4078_s3 = inlined_call_operand.hbm [shape: f32[16,32], index: 3, kind: input, shape index: {}]   ;;  %s4079_s4 = inlined_call_operand.vmem [shape: f32[1,16], index: 4, kind: input, shape index: {}]   ;;  %s4080_s5 = inlined_call_operand.hbm [shape: f32[128,256], index: 5, kind: input, shape index: {}]   ;;  %s4081_s6 = inlined_call_operand.vmem [shape: f32[1,128], index: 6, kind: input, shape index: {}]   ;;  %s4082_s7 = inlined_call_operand.hbm [shape: f32[16,128], index: 7, kind: output, shape index: {}]  }
   0x1   :  { %13 = vsyncpa [#allocation6], 0 }
   0x2   :  { %14 = vsyncpa [#allocation9], 0 }
   0x3   :  { %15 = vsyncpa [#allocation4], 0  ;;  %s3642_s24 = smov [#allocation5]   ;;  %s3643_s26 = smov [#allocation2]  }
   0x4   :  { %s33_s25 = sshll.u32 %s3642_s24, 4  ;;  %s21_s27 = sshll.u32 %s3643_s26, 4  ;;  %s34_s25 = int_to_ptr.vmem [resolvable:$true] %s33_s25  ;;  %s3699_s27 = int_to_ptr.vmem [resolvable:$true] %s21_s27 }
   0x5   :  { %s3524_s30 = scalar_lea.hbm %s4076_s1, 256 }
   0x6   :  { %p3525_p0 = scmp.ne.s32.totalorder %s4076_s1, %s3524_s30  ;;  %p3528_p1 = scmp.lt.u32.totalorder %s3524_s30, %s4076_s1 }
   0x8   :  { %p3530_p2 = pnand %p3528_p1, %p3525_p0 }
   0xa   :  { %3533 = shalt.err (!%p3530_p2)
}
   0xb   :  { %s3534_s12 = scalar_lea.vmem %s34_s25, 256  ;;  %p3539_p4 = scmp.lt.s32.totalorder %s34_s25, %s34_s25 }
   0xc   :  { %p3535_p3 = scmp.ne.s32.totalorder %s34_s25, %s3534_s12  ;;  %p3540_p5 = scmp.lt.s32.totalorder %s3534_s12, %s3534_s12 }
   0xe   :  { %p3541_p6 = por %p3540_p5, %p3539_p4 }
  0x10   :  { %p3542_p7 = pnand %p3541_p6, %p3535_p3 }
  0x12   :  { %3545 = shalt.err (!%p3542_p7)
}
  0x13   :  { %s3644_s13 = smov 128   ;;  %s3645_s14 = smov 8  }
  0x14   :  { %39 = dma.hbm_to_vmem [thread:$0]  %s4076_s1, 256, %s34_s25, [#allocation6], %s3644_s13, %s3644_s13, %s3645_s14  }
  0x15   :  { %s3546_s19 = scalar_lea.hbm %s4075_s0, 2048 }
  0x16   :  { %p3547_p8 = scmp.ne.s32.totalorder %s4075_s0, %s3546_s19  ;;  %p3550_p9 = scmp.lt.u32.totalorder %s3546_s19, %s4075_s0 }
  0x18   :  { %p3552_p10 = pnand %p3550_p9, %p3547_p8 }
  0x1a   :  { %3555 = shalt.err (!%p3552_p10)
}
  0x1b   :  { %s3556_s24 = scalar_lea.vmem %s3699_s27, 2048  ;;  %p3561_p12 = scmp.lt.s32.totalorder %s3699_s27, %s3699_s27 }
  0x1c   :  { %p3557_p11 = scmp.ne.s32.totalorder %s3699_s27, %s3556_s24  ;;  %p3562_p13 = scmp.lt.s32.totalorder %s3556_s24, %s3556_s24 }
  0x1e   :  { %p3563_p0 = por %p3562_p13, %p3561_p12 }
  0x20   :  { %p3564_p1 = pnand %p3563_p0, %p3557_p11 }
  0x22   :  { %3567 = shalt.err (!%p3564_p1)
}
  0x23   :  { %27 = dma.hbm_to_vmem [thread:$0]  %s4075_s0, 2048, %s3699_s27, [#allocation3], %s3644_s13, %s3644_s13, %s3645_s14  }
  0x24   :  { %s3646_s26 = smov [#allocation7]   ;;  %s3647_s29 = smov [#allocation8]  }
  0x25   :  { %s47_s28 = sshll.u32 %s3646_s26, 4  ;;  %s61_s30 = sshll.u32 %s3647_s29, 4  ;;  %s48_s28 = int_to_ptr.vmem [resolvable:$true] %s47_s28  ;;  %s3736_s30 = int_to_ptr.vmem [resolvable:$true] %s61_s30 }
  0x26   :  { %s3568_s10 = scalar_lea.hbm %s4078_s3, 256 }
  0x27   :  { %p3569_p2 = scmp.ne.s32.totalorder %s4078_s3, %s3568_s10  ;;  %p3572_p3 = scmp.lt.u32.totalorder %s3568_s10, %s4078_s3 }
  0x29   :  { %p3574_p4 = pnand %p3572_p3, %p3569_p2 }
  0x2b   :  { %3577 = shalt.err (!%p3574_p4)
}
  0x2c   :  { %s3578_s0 = scalar_lea.vmem %s48_s28, 256  ;;  %p3583_p6 = scmp.lt.s32.totalorder %s48_s28, %s48_s28 }
  0x2d   :  { %p3579_p5 = scmp.ne.s32.totalorder %s48_s28, %s3578_s0  ;;  %p3584_p7 = scmp.lt.s32.totalorder %s3578_s0, %s3578_s0 }
  0x2f   :  { %p3585_p8 = por %p3584_p7, %p3583_p6 }
  0x31   :  { %p3586_p9 = pnand %p3585_p8, %p3579_p5 }
  0x33   :  { %3589 = shalt.err (!%p3586_p9)
}
  0x34   :  { %53 = dma.hbm_to_vmem [thread:$0]  %s4078_s3, 256, %s48_s28, [#allocation6], %s3644_s13, %s3644_s13, %s3645_s14  }
  0x35   :  { %s3590_s20 = scalar_lea.hbm %s4080_s5, 4096 }
  0x36   :  { %p3591_p10 = scmp.ne.s32.totalorder %s4080_s5, %s3590_s20  ;;  %p3594_p11 = scmp.lt.u32.totalorder %s3590_s20, %s4080_s5 }
  0x38   :  { %p3596_p12 = pnand %p3594_p11, %p3591_p10 }
  0x3a   :  { %3599 = shalt.err (!%p3596_p12)
}
  0x3b   :  { %s3600_s1 = scalar_lea.vmem %s3736_s30, 4096  ;;  %p3605_p0 = scmp.lt.s32.totalorder %s3736_s30, %s3736_s30 }
  0x3c   :  { %p3601_p13 = scmp.ne.s32.totalorder %s3736_s30, %s3600_s1  ;;  %p3606_p1 = scmp.lt.s32.totalorder %s3600_s1, %s3600_s1 }
  0x3e   :  { %p3607_p2 = por %p3606_p1, %p3605_p0 }
  0x40   :  { %p3608_p3 = pnand %p3607_p2, %p3601_p13 }
  0x42   :  { %3611 = shalt.err (!%p3608_p3)
}
  0x43   :  { %s3648_s3 = smov 256   ;;  %s3649_s25 = smov 16  }
  0x44   :  { %67 = dma.hbm_to_vmem [thread:$0]  %s4080_s5, 4096, %s3736_s30, [#allocation9], %s3648_s3, %s3648_s3, %s3649_s25  }
  0x45   :  { %3634 = dma.done.wait [#allocation3], 2048  }
  0x46   :  { %3635 = vsyncadd [#allocation3], 4294965248 }
  0x47   :  { %3636 = dma.done.wait [#allocation6], 512  }
  0x48   :  { %3637 = vsyncadd [#allocation6], 4294966784 }
  0x49   :  { %3638 = dma.done.wait [#allocation9], 4096  }
  0x4a   :  { %3639 = vsyncadd [#allocation9], 4294963200  ;;  %vm107_vm0 = vcmask 261120   ;;  %v98_v1 = vld [vmem:[#allocation5] sm:$0xff]  ;;  %v99_v2 = vld [vmem:[#allocation5 + $0x8] sm:$0xff]  ;;  %vm499_vm2 = vcmask 64512  }
  0x4b   :  { %vm3773_vm1 = vmpackc.low %vm107_vm0, %vm107_vm0  ;;  %v82_v3 = vld [vmem:[#allocation2] sm:$0xff]  ;;  %v3392_v4 = vpack.c.bf16 %v99_v2, %v98_v1  ;;  %v307_v5 = vld [vmem:[#allocation7] sm:$0xff]  ;;  %s3653_s8 = smov 48   ;;  %s3654_s9 = smov 80   ;;  %vm2932_vm3 = vcmask 130048   ;;  %vm2937_vm4 = vcmask 392192  }
  0x4c   :  { %3260 = vmatprep.mubr.msk.f32.mxu1 %vm107_vm0, %v82_v3  ;;  %v308_v6 = vld [vmem:[#allocation7 + $0x8] sm:$0xff]  ;;  %v83_v8 = vld [vmem:[#allocation2 + $0x8] sm:$0xff]  ;;  %v84_v9 = vld [vmem:[#allocation2 + $0x10] sm:$0xff]  ;;  %s3655_s10 = smov 64   ;;  %s3656_s11 = smov 96   ;;  %vm2940_vm5 = vcmask 523264  }
  0x4d   :  { %3394 = vmatprep.subr.msk.bf16.mxu1 %vm3773_vm1, %v3392_v4  ;;  %v3398_v7 = vpack.c.bf16 %v308_v6, %v307_v5  ;;  %v85_v10 = vld [vmem:[#allocation2 + $0x18] sm:$0xff]  ;;  %v86_v11 = vld [vmem:[#allocation2 + $0x20] sm:$0xff]  ;;  %v87_v12 = vld [vmem:[#allocation2 + $0x28] sm:$0xff]  ;;  %s3657_s12 = smov 112   ;;  %vm2943_vm6 = vcmask 654336   ;;  %vm2946_vm7 = vcmask 785408  }
  0x4e   :  { %3397 = vmatpush3.bf16.xpose.msk.msra.mxu1 %vm3773_vm1, %v3392_v4  ;;  %v88_v13 = vld [vmem:[#allocation2 + $0x30] sm:$0xff]  ;;  %v89_v14 = vld [vmem:[#allocation2 + $0x38] sm:$0xff]  ;;  %v90_v15 = vld [vmem:[#allocation2 + $0x40] sm:$0xff]  ;;  %vm2949_vm8 = vcmask 916480   ;;  %s3658_s0 = smov [#allocation10]  }
  0x4f   :  { %3400 = vmatprep.subr.msk.bf16.mxu1 %vm3773_vm1, %v3398_v7  ;;  %v91_v16 = vld [vmem:[#allocation2 + $0x48] sm:$0xff]  ;;  %v92_v17 = vld [vmem:[#allocation2 + $0x50] sm:$0xff]  ;;  %v93_v18 = vld [vmem:[#allocation2 + $0x58] sm:$0xff]  ;;  %s3087_s27 = sshll.u32 %s3658_s0, 4  ;;  %s3088_s27 = int_to_ptr.vmem [resolvable:$true] %s3087_s27 }
  0x50   :  { %v94_v19 = vld [vmem:[#allocation2 + $0x60] sm:$0xff]  ;;  %v95_v20 = vld [vmem:[#allocation2 + $0x68] sm:$0xff]  ;;  %v96_v21 = vld [vmem:[#allocation2 + $0x70] sm:$0xff]  ;;  %s3612_s17 = scalar_lea.vmem %s3088_s27, 256  ;;  %p3617_p5 = scmp.lt.s32.totalorder %s3088_s27, %s3088_s27 }
  0x51   :  { %v97_v22 = vld [vmem:[#allocation2 + $0x78] sm:$0xff]  ;;  %v3101_v23 = vld [vmem:[%s4077_s2] ss:$0 sm:$0xff]  ;;  %p3613_p4 = scmp.ne.s32.totalorder %s3088_s27, %s3612_s17  ;;  %p3618_p6 = scmp.lt.s32.totalorder %s3612_s17, %s3612_s17 }
  0x52   :  { %v3120_v53 = vld [vmem:[%s4079_s4] ss:$0 sm:$0xff]  ;;  %s3652_s4 = smov 32  }
  0x53   :  { %p3619_p7 = por %p3618_p6, %p3617_p5 }
  0x55   :  { %3261 = vmatmul.mubr.msk.f32.vlgmr.msra.gmra.mrb[0].mxu1 %vm107_vm0, %v83_v8  ;;  %p3620_p8 = pnand %p3619_p7, %p3613_p4 }
  0x56   :  { %3263 = vmatprep.mubr.msk.f32.mxu1 %vm107_vm0, %v84_v9  ;;  %3403 = vmatpush3.bf16.xpose.msk.msra.mxu1 %vm3773_vm1, %v3398_v7 }
  0x59   :  { %3264 = vmatmul.mubr.msk.f32.gmra.mrb[2].mxu1 %vm107_vm0, %v85_v10 }
  0x5a   :  { %3266 = vmatprep.mubr.msk.f32.mxu1 %vm107_vm0, %v86_v11 }
  0x5d   :  { %3267 = vmatmul.mubr.msk.f32.gmra.mrb[4].mxu1 %vm107_vm0, %v87_v12 }
  0x5e   :  { %3269 = vmatprep.mubr.msk.f32.mxu1 %vm107_vm0, %v88_v13 }
  0x61   :  { %3270 = vmatmul.mubr.msk.f32.gmra.mrb[6].mxu1 %vm107_vm0, %v89_v14 }
  0x62   :  { %3272 = vmatprep.mubr.msk.f32.mxu1 %vm107_vm0, %v90_v15 }
  0x65   :  { %3273 = vmatmul.mubr.msk.f32.gmra.mrb[8].mxu1 %vm107_vm0, %v91_v16 }
  0x66   :  { %3275 = vmatprep.mubr.msk.f32.mxu1 %vm107_vm0, %v92_v17 }
  0x69   :  { %3276 = vmatmul.mubr.msk.f32.gmra.mrb[10].mxu1 %vm107_vm0, %v93_v18 }
  0x6a   :  { %3278 = vmatprep.mubr.msk.f32.mxu1 %vm107_vm0, %v94_v19 }
  0x6d   :  { %3279 = vmatmul.mubr.msk.f32.gmra.mrb[12].mxu1 %vm107_vm0, %v95_v20 }
  0x6e   :  { %3281 = vmatprep.mubr.msk.f32.mxu1 %vm107_vm0, %v96_v21 }
  0x71   :  { %3282 = vmatmul.mubr.msk.f32.gmra.mrb[14].mxu1 %vm107_vm0, %v97_v22 }
  0x72   :  { %3288 = vmatprep.mubr.msk.f32.mxu1 %vm107_vm0, %v82_v3 }
  0x75   :  { %3289 = vmatmul.mubr.msk.f32.vlgmr.msra.gmra.mrb[16].mxu1 %vm107_vm0, %v83_v8 }
  0x76   :  { %3291 = vmatprep.mubr.msk.f32.mxu1 %vm107_vm0, %v84_v9 }
  0x79   :  { %3292 = vmatmul.mubr.msk.f32.gmra.mrb[18].mxu1 %vm107_vm0, %v85_v10 }
  0x7a   :  { %3294 = vmatprep.mubr.msk.f32.mxu1 %vm107_vm0, %v86_v11 }
  0x7d   :  { %3295 = vmatmul.mubr.msk.f32.gmra.mrb[20].mxu1 %vm107_vm0, %v87_v12 }
  0x7e   :  { %3297 = vmatprep.mubr.msk.f32.mxu1 %vm107_vm0, %v88_v13 }
  0x81   :  { %3298 = vmatmul.mubr.msk.f32.gmra.mrb[22].mxu1 %vm107_vm0, %v89_v14 }
  0x82   :  { %3300 = vmatprep.mubr.msk.f32.mxu1 %vm107_vm0, %v90_v15 }
  0x85   :  { %3301 = vmatmul.mubr.msk.f32.gmra.mrb[24].mxu1 %vm107_vm0, %v91_v16 }
  0x86   :  { %3303 = vmatprep.mubr.msk.f32.mxu1 %vm107_vm0, %v92_v17 }
  0x89   :  { %3304 = vmatmul.mubr.msk.f32.gmra.mrb[26].mxu1 %vm107_vm0, %v93_v18 }
  0x8a   :  { %3306 = vmatprep.mubr.msk.f32.mxu1 %vm107_vm0, %v94_v19 }
  0x8d   :  { %3307 = vmatmul.mubr.msk.f32.gmra.mrb[28].mxu1 %vm107_vm0, %v95_v20 }
  0x8e   :  { %3309 = vmatprep.mubr.msk.f32.mxu1 %vm107_vm0, %v96_v21 }
  0x91   :  { %3310 = vmatmul.mubr.msk.f32.gmra.mrb[30].mxu1 %vm107_vm0, %v97_v22 }
 0x128   :  { %v3262_v24 = vpop.f32.mrb[0].mxu1 }
 0x129   :  { %v228_v25 = vpop.f32.mrb[1].mxu1  ;;  %v234_v26 = vadd.f32 %v3262_v24, %v3101_v23 }
 0x12a   :  { %v229_v30 = vadd.f32 %v3101_v23, %v228_v25 }
 0x12b   :  { %581 = vxpose.xlu0.b32.start.end [1/1] (short) (narrow) %v234_v26, 16 }
 0x12c   :  { %v3265_v27 = vpop.f32.mrb[2].mxu1 }
 0x12d   :  { %v238_v28 = vpop.f32.mrb[3].mxu1  ;;  %v244_v29 = vadd.f32 %v3265_v27, %v3101_v23 }
 0x12e   :  { %v239_v33 = vadd.f32 %v3101_v23, %v238_v28 }
 0x12f   :  { %807 = vxpose.xlu1.b32.start.end [1/1] (short) (narrow) %v244_v29, 16 }
 0x130   :  { %467 = vxpose.xlu0.b32.start.end [1/1] (short) (narrow) %v229_v30, 16  ;;  %v3268_v31 = vpop.f32.mrb[4].mxu1 }
 0x131   :  { %v248_v32 = vpop.f32.mrb[5].mxu1  ;;  %v254_v36 = vadd.f32 %v3268_v31, %v3101_v23 }
 0x132   :  { %v249_v34 = vadd.f32 %v3101_v23, %v248_v32 }
 0x134   :  { %694 = vxpose.xlu1.b32.start.end [1/1] (short) (narrow) %v239_v33, 16  ;;  %v3271_v35 = vpop.f32.mrb[6].mxu1 }
 0x135   :  { %920 = vxpose.xlu0.b32.start.end [1/1] (short) (narrow) %v249_v34, 16  ;;  %v258_v37 = vpop.f32.mrb[7].mxu1  ;;  %v264_v41 = vadd.f32 %v3271_v35, %v3101_v23 }
 0x136   :  { %v259_v38 = vadd.f32 %v3101_v23, %v258_v37 }
 0x138   :  { %v3274_v39 = vpop.f32.mrb[8].mxu1 }
 0x139   :  { %1033 = vxpose.xlu1.b32.start.end [1/1] (short) (narrow) %v254_v36, 16  ;;  %v268_v40 = vpop.f32.mrb[9].mxu1  ;;  %v274_v45 = vadd.f32 %v3274_v39, %v3101_v23 }
 0x13a   :  { %1146 = vxpose.xlu0.b32.start.end [1/1] (short) (narrow) %v259_v38, 16  ;;  %v269_v42 = vadd.f32 %v3101_v23, %v268_v40 }
 0x13c   :  { %v3277_v43 = vpop.f32.mrb[10].mxu1 }
 0x13d   :  { %v278_v44 = vpop.f32.mrb[11].mxu1  ;;  %v284_v49 = vadd.f32 %v3277_v43, %v3101_v23 }
 0x13e   :  { %1259 = vxpose.xlu1.b32.start.end [1/1] (short) (narrow) %v264_v41, 16  ;;  %v279_v46 = vadd.f32 %v3101_v23, %v278_v44 }
 0x13f   :  { %1372 = vxpose.xlu0.b32.start.end [1/1] (short) (narrow) %v269_v42, 16 }
 0x140   :  { %v3280_v47 = vpop.f32.mrb[12].mxu1 }
 0x141   :  { %v288_v48 = vpop.f32.mrb[13].mxu1  ;;  %v294_v55 = vadd.f32 %v3280_v47, %v3101_v23 }
 0x142   :  { %v289_v51 = vadd.f32 %v3101_v23, %v288_v48 }
 0x143   :  { %1485 = vxpose.xlu1.b32.start.end [1/1] (short) (narrow) %v274_v45, 16 }
 0x144   :  { %1598 = vxpose.xlu0.b32.start.end [1/1] (short) (narrow) %v279_v46, 16  ;;  %v3283_v50 = vpop.f32.mrb[14].mxu1 }
 0x145   :  { %v298_v52 = vpop.f32.mrb[15].mxu1  ;;  %v304_v63 = vadd.f32 %v3283_v50, %v3101_v23 }
 0x146   :  { %v299_v58 = vadd.f32 %v3101_v23, %v298_v52 }
 0x148   :  { %1711 = vxpose.xlu1.b32.start.end [1/1] (short) (narrow) %v284_v49, 16  ;;  %v3290_v54 = vpop.f32.mrb[16].mxu1 }
 0x149   :  { %1824 = vxpose.xlu0.b32.start.end [1/1] (short) (narrow) %v289_v51, 16  ;;  %v394_v56 = vadd.f32 %v3290_v54, %v3120_v53  ;;  %v388_v57 = vpop.f32.mrb[17].mxu1 }
 0x14a   :  { %v389_v59 = vadd.f32 %v3120_v53, %v388_v57  ;;  %v2967_v57 = vld [vmem:[#allocation8 + $0x8] sm:$0xff] }
 0x14b   :  { %3317 = vmatprep.subr.mxu1 %v394_v56 }
 0x14c   :  { %3312 = vmatprep.subr.mxu0 %v389_v59  ;;  %v3293_v60 = vpop.f32.mrb[18].mxu1  ;;  %3318 = vmatpush3.msra.mxu1 %v394_v56 }
 0x14d   :  { %1937 = vxpose.xlu1.b32.start.end [1/1] (short) (narrow) %v294_v55, 16  ;;  %v404_v61 = vadd.f32 %v3293_v60, %v3120_v53  ;;  %3313 = vmatpush3.msra.mxu0 %v389_v59  ;;  %v398_v62 = vpop.f32.mrb[19].mxu1  ;;  %v2966_v59 = vld [vmem:[#allocation8] sm:$0xff] }
 0x14e   :  { %2050 = vxpose.xlu0.b32.start.end [1/1] (short) (narrow) %v299_v58, 16  ;;  %v399_v0 = vadd.f32 %v3120_v53, %v398_v62  ;;  %v2969_v58 = vld [vmem:[#allocation8 + $0x18] sm:$0xff]  ;;  %v2971_v62 = vld [vmem:[#allocation8 + $0x28] sm:$0xff] }
 0x14f   :  { %3327 = vmatprep.subr.mxu1 %v404_v61  ;;  %v3404_v60 = vpack.c.bf16 %v2969_v58, %v2967_v57 }
 0x150   :  { %3322 = vmatprep.subr.mxu0 %v399_v0  ;;  %v3296_v1 = vpop.f32.mrb[20].mxu1 }
 0x151   :  { %v414_v2 = vadd.f32 %v3296_v1, %v3120_v53  ;;  %v408_v3 = vpop.f32.mrb[21].mxu1 }
 0x152   :  { %2163 = vxpose.xlu1.b32.start.end [1/1] (short) (narrow) %v304_v63, 16  ;;  %v409_v4 = vadd.f32 %v3120_v53, %v408_v3  ;;  %v2973_v63 = vld [vmem:[#allocation8 + $0x38] sm:$0xff]  ;;  %v2972_v3 = vld [vmem:[#allocation8 + $0x30] sm:$0xff] }
 0x153   :  { %v3408_v1 = vpack.c.bf16 %v2973_v63, %v2971_v62 }
 0x154   :  { %v3299_v5 = vpop.f32.mrb[22].mxu1 }
 0x155   :  { %v424_v6 = vadd.f32 %v3299_v5, %v3120_v53  ;;  %v418_v7 = vpop.f32.mrb[23].mxu1  ;;  %v2977_v5 = vld [vmem:[#allocation8 + $0x58] sm:$0xff] }
 0x156   :  { %v419_v8 = vadd.f32 %v3120_v53, %v418_v7 }
 0x158   :  { %v3302_v9 = vpop.f32.mrb[24].mxu1 }
 0x159   :  { %v3823_v10 = vadd.f32 %v3302_v9, %v3120_v53  ;;  %v428_v11 = vpop.f32.mrb[25].mxu1  ;;  %v2976_v9 = vld [vmem:[#allocation8 + $0x50] sm:$0xff] }
 0x15a   :  { %v429_v12 = vadd.f32 %v3120_v53, %v428_v11  ;;  %v2981_v11 = vld [vmem:[#allocation8 + $0x78] sm:$0xff] }
 0x15c   :  { %v3305_v13 = vpop.f32.mrb[26].mxu1 }
 0x15d   :  { %v3825_v14 = vadd.f32 %v3305_v13, %v3120_v53  ;;  %v438_v15 = vpop.f32.mrb[27].mxu1 }
 0x15e   :  { %v3827_v16 = vadd.f32 %v3120_v53, %v438_v15  ;;  %v2980_v15 = vld [vmem:[#allocation8 + $0x70] sm:$0xff] }
 0x160   :  { %v3308_v17 = vpop.f32.mrb[28].mxu1 }
 0x161   :  { %v3829_v18 = vadd.f32 %v3308_v17, %v3120_v53  ;;  %v448_v19 = vpop.f32.mrb[29].mxu1  ;;  %v2985_v17 = vld [vmem:[#allocation8 + $0x98] sm:$0xff] }
 0x162   :  { %v3831_v20 = vadd.f32 %v3120_v53, %v448_v19 }
 0x164   :  { %v3311_v21 = vpop.f32.mrb[30].mxu1 }
 0x165   :  { %v3833_v22 = vadd.f32 %v3311_v21, %v3120_v53  ;;  %v458_v23 = vpop.f32.mrb[31].mxu1  ;;  %v2984_v21 = vld [vmem:[#allocation8 + $0x90] sm:$0xff] }
 0x166   :  { %v3835_v24 = vadd.f32 %v3120_v53, %v458_v23  ;;  %v2989_v23 = vld [vmem:[#allocation8 + $0xb8] sm:$0xff] }
 0x1ab   :  { %v597_v25 = vpop.trf.xlu0 }
 0x1ac   :  { %3319 = vmatprep.mubr.msk.f32.mxu1 %vm499_vm2, %v597_v25 }
 0x1af   :  { %v598_v26 = vpop.trf.xlu0  ;;  %v823_v27 = vpop.trf.xlu1 }
 0x1b0   :  { %3320 = vmatmul.mubr.msk.f32.vlgmr.msra.gmra.mrb[32].mxu1 %vm499_vm2, %v598_v26  ;;  %v2986_v26 = vld [vmem:[#allocation8 + $0xa0] sm:$0xff] }
 0x1b1   :  { %3329 = vmatprep.mubr.msk.f32.mxu1 %vm499_vm2, %v823_v27  ;;  %3328 = vmatpush3.msra.mxu1 %v404_v61  ;;  %v2968_v61 = vld [vmem:[#allocation8 + $0x10] sm:$0xff] }
 0x1b2   :  { %3337 = vmatprep.subr.mxu1 %v414_v2  ;;  %v2988_v27 = vld [vmem:[#allocation8 + $0xb0] sm:$0xff] }
 0x1b3   :  { %v824_v28 = vpop.trf.xlu1  ;;  %v483_v29 = vpop.trf.xlu0 }
 0x1b4   :  { %3330 = vmatmul.mubr.msk.f32.vlgmr.msra.gmra.mrb[34].mxu1 %vm499_vm2, %v824_v28  ;;  %3314 = vmatprep.mubr.msk.f32.mxu0 %vm499_vm2, %v483_v29 }
 0x1b5   :  { %3338 = vmatpush3.msra.mxu1 %v414_v2  ;;  %v2970_v2 = vld [vmem:[#allocation8 + $0x20] sm:$0xff] }
 0x1b6   :  { %3347 = vmatprep.subr.mxu1 %v424_v6 }
 0x1b7   :  { %v710_v30 = vpop.trf.xlu1  ;;  %v484_v31 = vpop.trf.xlu0 }
 0x1b8   :  { %3315 = vmatmul.mubr.msk.f32.vlgmr.msra.gmra.mrb[0].mxu0 %vm499_vm2, %v484_v31  ;;  %v3650_v31 = vmov 1983009808  }
 0x1b9   :  { %3324 = vmatprep.mubr.msk.f32.mxu0 %vm499_vm2, %v710_v30  ;;  %3323 = vmatpush3.msra.mxu0 %v399_v0  ;;  %v3406_v0 = vpack.c.bf16 %v2968_v61, %v2966_v59  ;;  %v3426_v30 = vpack.c.bf16 %v2988_v27, %v2986_v26 }
 0x1ba   :  { %3332 = vmatprep.subr.mxu0 %v409_v4 }
 0x1bb   :  { %v711_v32 = vpop.trf.xlu1  ;;  %v936_v33 = vpop.trf.xlu0 }
 0x1bc   :  { %3325 = vmatmul.mubr.msk.f32.vlgmr.msra.gmra.mrb[2].mxu0 %vm499_vm2, %v711_v32  ;;  %v2279_v32 = vunpack.c.l.s4 %v3650_v31 }
 0x1bd   :  { %3334 = vmatprep.mubr.msk.f32.mxu0 %vm499_vm2, %v936_v33  ;;  %3333 = vmatpush3.msra.mxu0 %v409_v4  ;;  %v2975_v4 = vld [vmem:[#allocation8 + $0x48] sm:$0xff]  ;;  %v2281_v33 = vlaneseq }
 0x1be   :  { %3342 = vmatprep.subr.mxu0 %v419_v8  ;;  %v3412_v7 = vpack.c.bf16 %v2977_v5, %v2975_v4 }
 0x1bf   :  { %v1049_v34 = vpop.trf.xlu1  ;;  %v937_v35 = vpop.trf.xlu0 }
 0x1c0   :  { %3339 = vmatprep.mubr.msk.f32.mxu1 %vm499_vm2, %v1049_v34  ;;  %3335 = vmatmul.mubr.msk.f32.vlgmr.msra.gmra.mrb[4].mxu0 %vm499_vm2, %v937_v35 }
 0x1c1   :  { %3343 = vmatpush3.msra.mxu0 %v419_v8  ;;  %v2974_v8 = vld [vmem:[#allocation8 + $0x40] sm:$0xff] }
 0x1c2   :  { %3352 = vmatprep.subr.mxu0 %v429_v12 }
 0x1c3   :  { %v1050_v36 = vpop.trf.xlu1  ;;  %v1162_v37 = vpop.trf.xlu0 }
 0x1c4   :  { %3340 = vmatmul.mubr.msk.f32.vlgmr.msra.gmra.mrb[36].mxu1 %vm499_vm2, %v1050_v36  ;;  %3344 = vmatprep.mubr.msk.f32.mxu0 %vm499_vm2, %v1162_v37 }
 0x1c5   :  { %3348 = vmatpush3.msra.mxu1 %v424_v6  ;;  %v3410_v6 = vpack.c.bf16 %v2972_v3, %v2970_v2 }
 0x1c6   :  { %3357 = vmatprep.subr.mxu1 %v3823_v10 }
 0x1c7   :  { %v1275_v38 = vpop.trf.xlu1  ;;  %v1163_v39 = vpop.trf.xlu0 }
 0x1c8   :  { %3345 = vmatmul.mubr.msk.f32.vlgmr.msra.gmra.mrb[6].mxu0 %vm499_vm2, %v1163_v39  ;;  %3349 = vmatprep.mubr.msk.f32.mxu1 %vm499_vm2, %v1275_v38 }
 0x1c9   :  { %3353 = vmatpush3.msra.mxu0 %v429_v12  ;;  %v3414_v12 = vpack.c.bf16 %v2976_v9, %v2974_v8 }
 0x1ca   :  { %3362 = vmatprep.subr.mxu0 %v3827_v16 }
 0x1cb   :  { %v1276_v40 = vpop.trf.xlu1  ;;  %v1388_v41 = vpop.trf.xlu0 }
 0x1cc   :  { %3350 = vmatmul.mubr.msk.f32.vlgmr.msra.gmra.mrb[38].mxu1 %vm499_vm2, %v1276_v40  ;;  %3354 = vmatprep.mubr.msk.f32.mxu0 %vm499_vm2, %v1388_v41  ;;  %v2280_v40 = vunpack.c.0.s8 %v2279_v32  ;;  %v2282_v41 = vshrl.u32 %v2281_v33, 7 }
 0x1cd   :  { %3358 = vmatpush3.msra.mxu1 %v3823_v10  ;;  %v2979_v10 = vld [vmem:[#allocation8 + $0x68] sm:$0xff] }
 0x1ce   :  { %3367 = vmatprep.subr.mxu1 %v3825_v14  ;;  %v3416_v13 = vpack.c.bf16 %v2981_v11, %v2979_v10 }
 0x1cf   :  { %v1501_v42 = vpop.trf.xlu1  ;;  %v1389_v43 = vpop.trf.xlu0 }
 0x1d0   :  { %3359 = vmatprep.mubr.msk.f32.mxu1 %vm499_vm2, %v1501_v42  ;;  %3355 = vmatmul.mubr.msk.f32.vlgmr.msra.gmra.mrb[8].mxu0 %vm499_vm2, %v1389_v43 }
 0x1d1   :  { %3363 = vmatpush3.msra.mxu0 %v3827_v16  ;;  %v2983_v16 = vld [vmem:[#allocation8 + $0x88] sm:$0xff] }
 0x1d2   :  { %3372 = vmatprep.subr.mxu0 %v3831_v20  ;;  %v3420_v19 = vpack.c.bf16 %v2985_v17, %v2983_v16 }
 0x1d3   :  { %v1502_v44 = vpop.trf.xlu1  ;;  %v1614_v45 = vpop.trf.xlu0 }
 0x1d4   :  { %3360 = vmatmul.mubr.msk.f32.vlgmr.msra.gmra.mrb[40].mxu1 %vm499_vm2, %v1502_v44  ;;  %3364 = vmatprep.mubr.msk.f32.mxu0 %vm499_vm2, %v1614_v45  ;;  %v3883_v44 = vsub.s32 %v2280_v40, %v2282_v41 }
 0x1d5   :  { %3368 = vmatpush3.msra.mxu1 %v3825_v14  ;;  %v2978_v14 = vld [vmem:[#allocation8 + $0x60] sm:$0xff] }
 0x1d6   :  { %3377 = vmatprep.subr.mxu1 %v3829_v18 }
 0x1d7   :  { %v1727_v46 = vpop.trf.xlu1  ;;  %v1615_v47 = vpop.trf.xlu0 }
 0x1d8   :  { %3365 = vmatmul.mubr.msk.f32.vlgmr.msra.gmra.mrb[10].mxu0 %vm499_vm2, %v1615_v47  ;;  %3369 = vmatprep.mubr.msk.f32.mxu1 %vm499_vm2, %v1727_v46 }
 0x1d9   :  { %3373 = vmatpush3.msra.mxu0 %v3831_v20  ;;  %v2982_v20 = vld [vmem:[#allocation8 + $0x80] sm:$0xff] }
 0x1da   :  { %3382 = vmatprep.subr.mxu0 %v3835_v24 }
 0x1db   :  { %v1728_v48 = vpop.trf.xlu1  ;;  %v1840_v49 = vpop.trf.xlu0 }
 0x1dc   :  { %3370 = vmatmul.mubr.msk.f32.vlgmr.msra.gmra.mrb[42].mxu1 %vm499_vm2, %v1728_v48  ;;  %3374 = vmatprep.mubr.msk.f32.mxu0 %vm499_vm2, %v1840_v49  ;;  %v3651_v49 = vmov 1934713408  }
 0x1dd   :  { %3378 = vmatpush3.msra.mxu1 %v3829_v18  ;;  %v3418_v18 = vpack.c.bf16 %v2980_v15, %v2978_v14 }
 0x1de   :  { %3387 = vmatprep.subr.mxu1 %v3833_v22 }
 0x1df   :  { %v1953_v50 = vpop.trf.xlu1  ;;  %v1841_v51 = vpop.trf.xlu0 }
 0x1e0   :  { %3379 = vmatprep.mubr.msk.f32.mxu1 %vm499_vm2, %v1953_v50  ;;  %3375 = vmatmul.mubr.msk.f32.vlgmr.msra.gmra.mrb[12].mxu0 %vm499_vm2, %v1841_v51  ;;  %v2343_v50 = vunpack.c.l.s4 %v3651_v49 }
 0x1e1   :  { %3383 = vmatpush3.msra.mxu0 %v3835_v24  ;;  %v3422_v24 = vpack.c.bf16 %v2984_v21, %v2982_v20 }
 0x1e2   :  { %3405 = vmatprep.subr.bf16.mxu0 %v3404_v60 }
 0x1e3   :  { %v1954_v52 = vpop.trf.xlu1  ;;  %v2066_v53 = vpop.trf.xlu0 }
 0x1e4   :  { %3380 = vmatmul.mubr.msk.f32.vlgmr.msra.gmra.mrb[44].mxu1 %vm499_vm2, %v1954_v52  ;;  %3384 = vmatprep.mubr.msk.f32.mxu0 %vm499_vm2, %v2066_v53 }
 0x1e5   :  { %3388 = vmatpush3.msra.mxu1 %v3833_v22  ;;  %v2987_v22 = vld [vmem:[#allocation8 + $0xa8] sm:$0xff] }
 0x1e6   :  { %v3424_v25 = vpack.c.bf16 %v2989_v23, %v2987_v22 }
 0x1e7   :  { %v2179_v54 = vpop.trf.xlu1  ;;  %v2067_v55 = vpop.trf.xlu0 }
 0x1e8   :  { %3385 = vmatmul.mubr.msk.f32.vlgmr.msra.gmra.mrb[14].mxu0 %vm499_vm2, %v2067_v55  ;;  %3389 = vmatprep.mubr.msk.f32.mxu1 %vm499_vm2, %v2179_v54 }
 0x1e9   :  { %3407 = vmatpush1.bf16.xpose.msra.mxu0 %v3406_v0 }
 0x1ea   :  { %3409 = vmatprep.subr.bf16.mxu0 %v3408_v1 }
 0x1eb   :  { %v2180_v56 = vpop.trf.xlu1 }
 0x1ec   :  { %3390 = vmatmul.mubr.msk.f32.vlgmr.msra.gmra.mrb[46].mxu1 %vm499_vm2, %v2180_v56 }
 0x1f1   :  { %3411 = vmatpush1.bf16.xpose.msra.mxu0 %v3410_v6 }
 0x1f2   :  { %3413 = vmatprep.subr.bf16.mxu0 %v3412_v7  ;;  %v2344_v7 = vunpack.c.0.s8 %v2343_v50 }
 0x1f4   :  { %v3893_v10 = vsub.s32 %v2344_v7, %v2282_v41 }
 0x1f9   :  { %3415 = vmatpush1.bf16.xpose.msra.mxu0 %v3414_v12 }
 0x1fa   :  { %3417 = vmatprep.subr.bf16.mxu0 %v3416_v13 }
 0x201   :  { %3419 = vmatpush1.bf16.xpose.msra.mxu0 %v3418_v18 }
 0x202   :  { %3421 = vmatprep.subr.bf16.mxu0 %v3420_v19 }
 0x209   :  { %3423 = vmatpush1.bf16.xpose.msra.mxu0 %v3422_v24 }
 0x20a   :  { %3425 = vmatprep.subr.bf16.mxu0 %v3424_v25 }
 0x211   :  { %3427 = vmatpush1.bf16.xpose.msra.mxu0 %v3426_v30 }
 0x283   :  { %v3321_v28 = vpop.f32.mrb[32].mxu1 }
 0x284   :  { %v685_v29 = vpop.f32.mrb[33].mxu1 }
 0x287   :  { %v3331_v34 = vpop.f32.mrb[34].mxu1 }
 0x288   :  { %v2564_v35 = vcombine.low %v3321_v28, %v3331_v34  ;;  %v2565_v36 = vcombine.high %v3321_v28, %v3331_v34  ;;  %v911_v37 = vpop.f32.mrb[35].mxu1 }
 0x289   :  { %v2292_v38 = vcombine.low %v685_v29, %v911_v37  ;;  %v2293_v39 = vcombine.high %v685_v29, %v911_v37  ;;  %v2993_v37 = vld [vmem:[#allocation8 + $0xd8] sm:$0xff] }
 0x28a   :  { %v2572_v53 = vrot.slane %v2564_v35, %v3883_v44  ;;  %v2579_v54 = vrot.slane %v2565_v36, %v3883_v44  ;;  %v2991_v36 = vld [vmem:[#allocation8 + $0xc8] sm:$0xff] }
 0x28b   :  { %v3316_v42 = vpop.f32.mrb[0].mxu0  ;;  %v2300_v57 = vrot.slane %v2292_v38, %v3883_v44  ;;  %v2307_v58 = vrot.slane %v2293_v39, %v3883_v44 }
 0x28c   :  { %v572_v43 = vpop.f32.mrb[1].mxu0 }
 0x28f   :  { %v3326_v45 = vpop.f32.mrb[2].mxu0 }
 0x290   :  { %v2548_v46 = vcombine.low %v3316_v42, %v3326_v45  ;;  %v2549_v47 = vcombine.high %v3316_v42, %v3326_v45  ;;  %v798_v48 = vpop.f32.mrb[3].mxu0  ;;  %v3428_v42 = vpack.c.bf16 %v2993_v37, %v2991_v36 }
 0x291   :  { %v2276_v51 = vcombine.low %v572_v43, %v798_v48  ;;  %v2277_v52 = vcombine.high %v572_v43, %v798_v48 }
 0x292   :  { %v2556_v55 = vrot.slane %v2548_v46, %v3883_v44  ;;  %v2563_v56 = vrot.slane %v2549_v47, %v3883_v44  ;;  %3429 = vmatprep.subr.bf16.mxu0 %v3428_v42 }
 0x293   :  { %v2284_v59 = vrot.slane %v2276_v51, %v3883_v44  ;;  %v2291_v60 = vrot.slane %v2277_v52, %v3883_v44  ;;  %v3336_v61 = vpop.f32.mrb[4].mxu0 }
 0x294   :  { %v2612_v62 = vcombine.low %v2556_v55, %v2572_v53  ;;  %v2613_v63 = vcombine.high %v2556_v55, %v2572_v53  ;;  %v2628_v0 = vcombine.low %v2563_v56, %v2579_v54  ;;  %v2629_v1 = vcombine.high %v2563_v56, %v2579_v54  ;;  %v1024_v2 = vpop.f32.mrb[5].mxu0 }
 0x295   :  { %v2340_v3 = vcombine.low %v2284_v59, %v2300_v57  ;;  %v2341_v4 = vcombine.high %v2284_v59, %v2300_v57  ;;  %v2356_v5 = vcombine.low %v2291_v60, %v2307_v58  ;;  %v2357_v6 = vcombine.high %v2291_v60, %v2307_v58 }
 0x296   :  { %v2627_v17 = vrot.slane %v2613_v63, %v3893_v10  ;;  %v3897_v18 = vrot.slane %v2628_v0, %v3893_v10  ;;  %v3900_v19 = vrot.slane %v2629_v1, %v3893_v10  ;;  %v3904_v22 = vrot.slane %v2612_v62, %v3893_v10 }
 0x297   :  { %v3341_v8 = vpop.f32.mrb[36].mxu1  ;;  %v2355_v20 = vrot.slane %v2341_v4, %v3893_v10  ;;  %v2364_v23 = vrot.slane %v2356_v5, %v3893_v10  ;;  %v3908_v24 = vrot.slane %v2357_v6, %v3893_v10  ;;  %v3912_v31 = vrot.slane %v2340_v3, %v3893_v10 }
 0x298   :  { %v1137_v9 = vpop.f32.mrb[37].mxu1 }
 0x29b   :  { %v3346_v11 = vpop.f32.mrb[6].mxu0 }
 0x29c   :  { %v2580_v12 = vcombine.low %v3336_v61, %v3346_v11  ;;  %v2581_v13 = vcombine.high %v3336_v61, %v3346_v11  ;;  %v1250_v14 = vpop.f32.mrb[7].mxu0 }
 0x29d   :  { %v2308_v15 = vcombine.low %v1024_v2, %v1250_v14  ;;  %v2309_v16 = vcombine.high %v1024_v2, %v1250_v14 }
 0x29e   :  { %v2588_v28 = vrot.slane %v2580_v12, %v3883_v44  ;;  %v2595_v32 = vrot.slane %v2581_v13, %v3883_v44 }
 0x29f   :  { %v3351_v21 = vpop.f32.mrb[38].mxu1  ;;  %v2316_v33 = vrot.slane %v2308_v15, %v3883_v44  ;;  %v2323_v38 = vrot.slane %v2309_v16, %v3883_v44 }
 0x2a0   :  { %v2596_v25 = vcombine.low %v3341_v8, %v3351_v21  ;;  %v2597_v26 = vcombine.high %v3341_v8, %v3351_v21  ;;  %v1363_v27 = vpop.f32.mrb[39].mxu1 }
 0x2a1   :  { %v2324_v29 = vcombine.low %v1137_v9, %v1363_v27  ;;  %v2325_v30 = vcombine.high %v1137_v9, %v1363_v27 }
 0x2a2   :  { %v2604_v34 = vrot.slane %v2596_v25, %v3883_v44  ;;  %v2611_v35 = vrot.slane %v2597_v26, %v3883_v44 }
 0x2a3   :  { %v2332_v39 = vrot.slane %v2324_v29, %v3883_v44  ;;  %v2339_v40 = vrot.slane %v2325_v30, %v3883_v44  ;;  %v3921_v41 = vpop.f32.mrb[8].mxu0  ;;  %v2995_v30 = vld [vmem:[#allocation8 + $0xe8] sm:$0xff] }
 0x2a4   :  { %v2644_v43 = vcombine.low %v2588_v28, %v2604_v34  ;;  %v2645_v45 = vcombine.high %v2588_v28, %v2604_v34  ;;  %v2660_v46 = vcombine.low %v2595_v32, %v2611_v35  ;;  %v2661_v47 = vcombine.high %v2595_v32, %v2611_v35  ;;  %v3923_v48 = vpop.f32.mrb[9].mxu0  ;;  %v2992_v28 = vld [vmem:[#allocation8 + $0xd0] sm:$0xff]  ;;  %v2997_v32 = vld [vmem:[#allocation8 + $0xf8] sm:$0xff] }
 0x2a5   :  { %v2372_v49 = vcombine.low %v2316_v33, %v2332_v39  ;;  %v2373_v50 = vcombine.high %v2316_v33, %v2332_v39  ;;  %v2388_v51 = vcombine.low %v2323_v38, %v2339_v40  ;;  %v2389_v52 = vcombine.high %v2323_v38, %v2339_v40 }
 0x2a6   :  { %v2659_v53 = vrot.slane %v2645_v45, %v3893_v10  ;;  %v2668_v54 = vrot.slane %v2660_v46, %v3893_v10  ;;  %v2675_v55 = vrot.slane %v2661_v47, %v3893_v10  ;;  %v3929_v56 = vrot.slane %v2644_v43, %v3893_v10 }
 0x2a7   :  { %v2387_v57 = vrot.slane %v2373_v50, %v3893_v10  ;;  %v2396_v58 = vrot.slane %v2388_v51, %v3893_v10  ;;  %v2403_v59 = vrot.slane %v2389_v52, %v3893_v10  ;;  %v3361_v60 = vpop.f32.mrb[40].mxu1  ;;  %v3935_v61 = vrot.slane %v2372_v49, %v3893_v10 }
 0x2a8   :  { %v1589_v62 = vpop.f32.mrb[41].mxu1  ;;  %v2678_v63 = vcombine.low %v2627_v17, %v2659_v53  ;;  %v2676_v0 = vcombine.low %v3904_v22, %v3929_v56  ;;  %v2677_v1 = vcombine.high %v3904_v22, %v3929_v56  ;;  %v2679_v2 = vcombine.high %v2627_v17, %v2659_v53  ;;  %v2994_v53 = vld [vmem:[#allocation8 + $0xe0] sm:$0xff] }
 0x2a9   :  { %v2406_v3 = vcombine.low %v2355_v20, %v2387_v57  ;;  %v2405_v4 = vcombine.high %v3912_v31, %v3935_v61  ;;  %v2404_v5 = vcombine.low %v3912_v31, %v3935_v61  ;;  %v2407_v6 = vcombine.high %v2355_v20, %v2387_v57  ;;  %v2990_v20 = vld [vmem:[#allocation8 + $0xc0] sm:$0xff] }
 0x2aa   :  { %v2409_v7 = vcombine.high %v2364_v23, %v2396_v58  ;;  %v2681_v8 = vcombine.high %v3897_v18, %v2668_v54  ;;  %v2408_v9 = vcombine.low %v2364_v23, %v2396_v58  ;;  %v2680_v11 = vcombine.low %v3897_v18, %v2668_v54  ;;  %v2996_v54 = vld [vmem:[#allocation8 + $0xf0] sm:$0xff] }
 0x2ab   :  { %v3366_v12 = vpop.f32.mrb[10].mxu0  ;;  %v3459_v13 = vpack.i.bf16 %v2406_v3, %v2678_v63  ;;  %v3454_v14 = vpack.i.bf16 %v2405_v4, %v2677_v1  ;;  %v3464_v15 = vpack.i.bf16 %v2407_v6, %v2679_v2  ;;  %v2410_v16 = vcombine.low %v3908_v24, %v2403_v59 }
 0x2ac   :  { %v2684_v17 = vcombine.low %v3921_v41, %v3366_v12  ;;  %v2685_v21 = vcombine.high %v3921_v41, %v3366_v12  ;;  %v1702_v25 = vpop.f32.mrb[11].mxu0  ;;  %v3474_v26 = vpack.i.bf16 %v2409_v7, %v2681_v8  ;;  %v3469_v27 = vpack.i.bf16 %v2408_v9, %v2680_v11 }
 0x2ad   :  { %v2412_v29 = vcombine.low %v3923_v48, %v1702_v25  ;;  %v2413_v23 = vcombine.high %v3923_v48, %v1702_v25  ;;  %3460 = vrot.lane.b32.xlu1 %v3459_v13, %s3652_s4  ;;  %3455 = vrot.lane.b32.xlu0 %v3454_v14, %s3649_s25  ;;  %v2682_v18 = vcombine.low %v3900_v19, %v2675_v55 }
 0x2ae   :  { %v2411_v33 = vcombine.high %v3908_v24, %v2403_v59  ;;  %v2683_v34 = vcombine.high %v3900_v19, %v2675_v55  ;;  %v3430_v37 = vpack.c.bf16 %v2992_v28, %v2990_v20  ;;  %v3432_v42 = vpack.c.bf16 %v2997_v32, %v2995_v30 }
 0x2af   :  { %v3371_v35 = vpop.f32.mrb[42].mxu1  ;;  %v3479_v36 = vpack.i.bf16 %v2410_v16, %v2682_v18  ;;  %v2692_v24 = vrot.slane %v2684_v17, %v3883_v44  ;;  %v2699_v19 = vrot.slane %v2685_v21, %v3883_v44  ;;  %v2420_v48 = vrot.slane %v2412_v29, %v3883_v44 }
 0x2b0   :  { %v2700_v38 = vcombine.low %v3361_v60, %v3371_v35  ;;  %v2701_v39 = vcombine.high %v3361_v60, %v3371_v35  ;;  %v1815_v40 = vpop.f32.mrb[43].mxu1  ;;  %v3484_v41 = vpack.i.bf16 %v2411_v33, %v2683_v34  ;;  %3431 = vmatpush1.bf16.xpose.msra.mxu0 %v3430_v37  ;;  %v2427_v49 = vrot.slane %v2413_v23, %v3883_v44 }
 0x2b1   :  { %v2428_v43 = vcombine.low %v1589_v62, %v1815_v40  ;;  %v2429_v45 = vcombine.high %v1589_v62, %v1815_v40  ;;  %3465 = vrot.lane.b32.xlu1 %v3464_v15, %s3653_s8  ;;  %3475 = vrot.lane.b32.xlu0 %v3474_v26, %s3654_s9  ;;  %v3434_v3 = vpack.c.bf16 %v2996_v54, %v2994_v53 }
 0x2b2   :  { %v2708_v46 = vrot.slane %v2700_v38, %v3883_v44  ;;  %v2715_v47 = vrot.slane %v2701_v39, %v3883_v44  ;;  %3433 = vmatprep.subr.bf16.mxu0 %v3432_v42 }
 0x2b3   :  { %v2436_v50 = vrot.slane %v2428_v43, %v3883_v44  ;;  %v2443_v51 = vrot.slane %v2429_v45, %v3883_v44  ;;  %v3376_v52 = vpop.f32.mrb[12].mxu0 }
 0x2b4   :  { %v2748_v55 = vcombine.low %v2692_v24, %v2708_v46  ;;  %v2749_v57 = vcombine.high %v2692_v24, %v2708_v46  ;;  %v2764_v58 = vcombine.low %v2699_v19, %v2715_v47  ;;  %v2765_v59 = vcombine.high %v2699_v19, %v2715_v47  ;;  %v1928_v60 = vpop.f32.mrb[13].mxu0 }
 0x2b5   :  { %v2476_v62 = vcombine.low %v2420_v48, %v2436_v50  ;;  %v2477_v63 = vcombine.high %v2420_v48, %v2436_v50  ;;  %v2492_v1 = vcombine.low %v2427_v49, %v2443_v51  ;;  %v2493_v2 = vcombine.high %v2427_v49, %v2443_v51  ;;  %3470 = vrot.lane.b32.xlu1 %v3469_v27, %s3655_s10 }
 0x2b6   :  { %3480 = vrot.lane.b32.xlu0 %v3479_v36, %s3656_s11  ;;  %v2763_v14 = vrot.slane %v2749_v57, %v3893_v10  ;;  %v2772_v15 = vrot.slane %v2764_v58, %v3893_v10  ;;  %v2779_v16 = vrot.slane %v2765_v59, %v3893_v10  ;;  %v3974_v21 = vrot.slane %v2748_v55, %v3893_v10 }
 0x2b7   :  { %v3381_v4 = vpop.f32.mrb[44].mxu1  ;;  %v2491_v25 = vrot.slane %v2477_v63, %v3893_v10  ;;  %v2500_v26 = vrot.slane %v2492_v1, %v3893_v10  ;;  %v2507_v29 = vrot.slane %v2493_v2, %v3893_v10  ;;  %v3980_v30 = vrot.slane %v2476_v62, %v3893_v10 }
 0x2b8   :  { %v2041_v6 = vpop.f32.mrb[45].mxu1  ;;  %3435 = vmatpush1.bf16.xpose.msra.mxu0 %v3434_v3 }
 0x2ba   :  { %3485 = vrot.lane.b32.xlu0 %v3484_v41, %s3657_s12 }
 0x2bb   :  { %v3386_v7 = vpop.f32.mrb[14].mxu0 }
 0x2bc   :  { %v2716_v8 = vcombine.low %v3376_v52, %v3386_v7  ;;  %v2717_v9 = vcombine.high %v3376_v52, %v3386_v7  ;;  %v2154_v11 = vpop.f32.mrb[15].mxu0 }
 0x2bd   :  { %v2444_v12 = vcombine.low %v1928_v60, %v2154_v11  ;;  %v2445_v13 = vcombine.high %v1928_v60, %v2154_v11 }
 0x2be   :  { %v2724_v32 = vrot.slane %v2716_v8, %v3883_v44  ;;  %v2731_v33 = vrot.slane %v2717_v9, %v3883_v44 }
 0x2bf   :  { %v3391_v17 = vpop.f32.mrb[46].mxu1  ;;  %v2452_v36 = vrot.slane %v2444_v12, %v3883_v44  ;;  %v2459_v37 = vrot.slane %v2445_v13, %v3883_v44 }
 0x2c0   :  { %v2732_v27 = vcombine.low %v3381_v4, %v3391_v17  ;;  %v2733_v20 = vcombine.high %v3381_v4, %v3391_v17  ;;  %v2267_v28 = vpop.f32.mrb[47].mxu1 }
 0x2c1   :  { %v2460_v23 = vcombine.low %v2041_v6, %v2267_v28  ;;  %v2461_v18 = vcombine.high %v2041_v6, %v2267_v28 }
 0x2c2   :  { %v2740_v34 = vrot.slane %v2732_v27, %v3883_v44  ;;  %v2747_v35 = vrot.slane %v2733_v20, %v3883_v44 }
 0x2c3   :  { %v2468_v38 = vrot.slane %v2460_v23, %v3883_v44  ;;  %v2475_v39 = vrot.slane %v2461_v18, %v3883_v44 }
 0x2c4   :  { %v2780_v40 = vcombine.low %v2724_v32, %v2740_v34  ;;  %v2781_v41 = vcombine.high %v2724_v32, %v2740_v34  ;;  %v2796_v42 = vcombine.low %v2731_v33, %v2747_v35  ;;  %v2797_v43 = vcombine.high %v2731_v33, %v2747_v35 }
 0x2c5   :  { %v2508_v45 = vcombine.low %v2452_v36, %v2468_v38  ;;  %v2509_v24 = vcombine.high %v2452_v36, %v2468_v38  ;;  %v2524_v19 = vcombine.low %v2459_v37, %v2475_v39  ;;  %v2525_v46 = vcombine.high %v2459_v37, %v2475_v39 }
 0x2c6   :  { %v2795_v47 = vrot.slane %v2781_v41, %v3893_v10  ;;  %v2804_v48 = vrot.slane %v2796_v42, %v3893_v10  ;;  %v2811_v49 = vrot.slane %v2797_v43, %v3893_v10  ;;  %v3994_v50 = vrot.slane %v2780_v40, %v3893_v10 }
 0x2c7   :  { %v2523_v51 = vrot.slane %v2509_v24, %v3893_v10  ;;  %v2532_v44 = vrot.slane %v2524_v19, %v3893_v10  ;;  %v2539_v52 = vrot.slane %v2525_v46, %v3893_v10  ;;  %v4000_v53 = vrot.slane %v2508_v45, %v3893_v10 }
 0x2c8   :  { %v2817_v54 = vcombine.high %v2772_v15, %v2804_v48  ;;  %v2812_v55 = vcombine.low %v3974_v21, %v3994_v50  ;;  %v2813_v57 = vcombine.high %v3974_v21, %v3994_v50  ;;  %v2819_v58 = vcombine.high %v2779_v16, %v2811_v49 }
 0x2c9   :  { %v2545_v59 = vcombine.high %v2500_v26, %v2532_v44  ;;  %v2541_v60 = vcombine.high %v3980_v30, %v4000_v53  ;;  %v2540_v62 = vcombine.low %v3980_v30, %v4000_v53  ;;  %v2547_v63 = vcombine.high %v2507_v29, %v2539_v52 }
 0x2ca   :  { %v2542_v1 = vcombine.low %v2491_v25, %v2523_v51  ;;  %v2814_v2 = vcombine.low %v2763_v14, %v2795_v47  ;;  %v2543_v10 = vcombine.high %v2491_v25, %v2523_v51  ;;  %v2815_v3 = vcombine.high %v2763_v14, %v2795_v47 }
 0x2cb   :  { %v3509_v4 = vpack.i.bf16 %v2545_v59, %v2817_v54  ;;  %v3489_v6 = vpack.i.bf16 %v2541_v60, %v2813_v57  ;;  %v3519_v7 = vpack.i.bf16 %v2547_v63, %v2819_v58  ;;  %v2544_v8 = vcombine.low %v2500_v26, %v2532_v44 }
 0x2cc   :  { %v3494_v9 = vpack.i.bf16 %v2542_v1, %v2814_v2  ;;  %v3499_v11 = vpack.i.bf16 %v2543_v10, %v2815_v3  ;;  %v2816_v12 = vcombine.low %v2772_v15, %v2804_v48  ;;  %v2546_v13 = vcombine.low %v2507_v29, %v2539_v52 }
 0x2cd   :  { %3510 = vrot.lane.b32.xlu0 %v3509_v4, %s3654_s9  ;;  %3490 = vrot.lane.b32.xlu1 %v3489_v6, %s3649_s25  ;;  %v2818_v17 = vcombine.low %v2779_v16, %v2811_v49 }
 0x2ce   :  { %v3504_v27 = vpack.i.bf16 %v2544_v8, %v2816_v12 }
 0x2cf   :  { %v3514_v20 = vpack.i.bf16 %v2546_v13, %v2818_v17 }
 0x2d1   :  { %3520 = vrot.lane.b32.xlu0 %v3519_v7, %s3657_s12  ;;  %3495 = vrot.lane.b32.xlu1 %v3494_v9, %s3652_s4 }
 0x2d5   :  { %3500 = vrot.lane.b32.xlu1 %v3499_v11, %s3653_s8 }
 0x2d9   :  { %3505 = vrot.lane.b32.xlu1 %v3504_v27, %s3655_s10 }
 0x2dd   :  { %3515 = vrot.lane.b32.xlu1 %v3514_v20, %s3656_s11 }
 0x31f   :  { %v3461_v14 = vpop.permute.xlu1 %3460  ;;  %v3456_v15 = vpop.permute.xlu0 %3455 }
 0x320   :  { %v3458_v25 = vunpack.i.h.bf16 %v3456_v15  ;;  %v3457_v26 = vunpack.i.l.bf16 %v3456_v15  ;;  %v3463_v16 = vunpack.i.h.bf16 %v3461_v14  ;;  %v3462_v23 = vunpack.i.l.bf16 %v3461_v14 }
 0x322   :  { %v2933_v18 = vsel %vm2932_vm3, %v2404_v5, %v3458_v25  ;;  %v2952_v32 = vsel %vm2932_vm3, %v2676_v0, %v3457_v26 }
 0x323   :  { %v3466_v28 = vpop.permute.xlu1 %3465  ;;  %v3476_v29 = vpop.permute.xlu0 %3475  ;;  %v2935_v36 = vsel %vm107_vm0, %v2933_v18, %v3463_v16  ;;  %v2954_v37 = vsel %vm107_vm0, %v2952_v32, %v3462_v23  ;;  %v3171_v16 = vld [vmem:[%s4081_s6] ss:$0 sm:$0xff] }
 0x324   :  { %v3468_v33 = vunpack.i.h.bf16 %v3466_v28  ;;  %v3467_v34 = vunpack.i.l.bf16 %v3466_v28  ;;  %v3478_v56 = vunpack.i.h.bf16 %v3476_v29  ;;  %v3477_v0 = vunpack.i.l.bf16 %v3476_v29 }
 0x326   :  { %v2938_v5 = vsel %vm2937_vm4, %v2935_v36, %v3468_v33  ;;  %v2956_v22 = vsel %vm2937_vm4, %v2954_v37, %v3467_v34 }
 0x327   :  { %v3471_v35 = vpop.permute.xlu1 %3470 }
 0x328   :  { %v3473_v38 = vunpack.i.h.bf16 %v3471_v35  ;;  %v3472_v31 = vunpack.i.l.bf16 %v3471_v35  ;;  %v3481_v61 = vpop.permute.xlu0 %3480 }
 0x329   :  { %v3483_v41 = vunpack.i.h.bf16 %v3481_v61  ;;  %v3482_v42 = vunpack.i.l.bf16 %v3481_v61 }
 0x32a   :  { %v2941_v39 = vsel %vm2940_vm5, %v2938_v5, %v3473_v38  ;;  %v2958_v40 = vsel %vm2940_vm5, %v2956_v22, %v3472_v31 }
 0x32b   :  { %v2960_v43 = vsel %vm2943_vm6, %v2958_v40, %v3477_v0  ;;  %v2944_v45 = vsel %vm2943_vm6, %v2941_v39, %v3478_v56 }
 0x32c   :  { %v3486_v24 = vpop.permute.xlu0 %3485  ;;  %v2962_v19 = vsel %vm2946_vm7, %v2960_v43, %v3482_v42  ;;  %v2947_v46 = vsel %vm2946_vm7, %v2944_v45, %v3483_v41 }
 0x32d   :  { %v3488_v47 = vunpack.i.h.bf16 %v3486_v24  ;;  %v3487_v48 = vunpack.i.l.bf16 %v3486_v24 }
 0x32f   :  { %v2964_v49 = vsel %vm2949_vm8, %v2962_v19, %v3487_v48  ;;  %v2950_v51 = vsel %vm2949_vm8, %v2947_v46, %v3488_v47 }
 0x330   :  { %3069 = vmatprep.mubr.f32.mxu0 %v2964_v49 }
 0x331   :  { %3070 = vmatmul.mubr.f32.vlgmr.msra.gmra.mrb[16].mxu0 %v2950_v51 }
 0x33f   :  { %v3491_v44 = vpop.permute.xlu1 %3490  ;;  %v3511_v59 = vpop.permute.xlu0 %3510 }
 0x340   :  { %v3493_v54 = vunpack.i.h.bf16 %v3491_v44  ;;  %v3492_v57 = vunpack.i.l.bf16 %v3491_v44  ;;  %v3512_v21 = vunpack.i.l.bf16 %v3511_v59 }
 0x342   :  { %v2934_v10 = vsel %vm2932_vm3, %v2540_v62, %v3493_v54  ;;  %v2953_v3 = vsel %vm2932_vm3, %v2812_v55, %v3492_v57  ;;  %v3513_v62 = vunpack.i.h.bf16 %v3511_v59 }
 0x343   :  { %v3496_v52 = vpop.permute.xlu1 %3495  ;;  %v3521_v13 = vpop.permute.xlu0 %3520 }
 0x344   :  { %v3498_v60 = vunpack.i.h.bf16 %v3496_v52  ;;  %v3497_v63 = vunpack.i.l.bf16 %v3496_v52  ;;  %v3523_v27 = vunpack.i.h.bf16 %v3521_v13  ;;  %v3522_v20 = vunpack.i.l.bf16 %v3521_v13 }
 0x346   :  { %v2936_v6 = vsel %vm107_vm0, %v2934_v10, %v3498_v60  ;;  %v2955_v7 = vsel %vm107_vm0, %v2953_v3, %v3497_v63 }
 0x347   :  { %v3501_v58 = vpop.permute.xlu1 %3500 }
 0x348   :  { %v3503_v1 = vunpack.i.h.bf16 %v3501_v58  ;;  %v3502_v2 = vunpack.i.l.bf16 %v3501_v58 }
 0x34a   :  { %v2939_v11 = vsel %vm2937_vm4, %v2936_v6, %v3503_v1  ;;  %v2957_v12 = vsel %vm2937_vm4, %v2955_v7, %v3502_v2 }
 0x34b   :  { %v3506_v4 = vpop.permute.xlu1 %3505 }
 0x34c   :  { %v3508_v8 = vunpack.i.h.bf16 %v3506_v4  ;;  %v3507_v9 = vunpack.i.l.bf16 %v3506_v4 }
 0x34e   :  { %v2942_v30 = vsel %vm2940_vm5, %v2939_v11, %v3508_v8  ;;  %v2959_v53 = vsel %vm2940_vm5, %v2957_v12, %v3507_v9 }
 0x34f   :  { %v3516_v50 = vpop.permute.xlu1 %3515  ;;  %v2961_v14 = vsel %vm2943_vm6, %v2959_v53, %v3512_v21  ;;  %v2945_v15 = vsel %vm2943_vm6, %v2942_v30, %v3513_v62 }
 0x350   :  { %v3518_v55 = vunpack.i.h.bf16 %v3516_v50  ;;  %v3517_v17 = vunpack.i.l.bf16 %v3516_v50 }
 0x352   :  { %v2963_v25 = vsel %vm2946_vm7, %v2961_v14, %v3517_v17  ;;  %v2948_v26 = vsel %vm2946_vm7, %v2945_v15, %v3518_v55 }
 0x353   :  { %v2965_v28 = vsel %vm2949_vm8, %v2963_v25, %v3522_v20  ;;  %v2951_v29 = vsel %vm2949_vm8, %v2948_v26, %v3523_v27 }
 0x354   :  { %3074 = vmatprep.mubr.f32.mxu0 %v2965_v28 }
 0x355   :  { %3075 = vmatmul.mubr.f32.gmra.mrb[18].mxu0 %v2951_v29 }
 0x404   :  { %v3071_v23 = vpop.f32.mrb[16].mxu0 }
 0x405   :  { %v3072_v18 = vadd.f32 %v3171_v16, %v3071_v23  ;;  %v3073_v32 = vpop.f32.mrb[17].mxu0 }
 0x407   :  { %3080 = vst [vmem:[#allocation10] sm:$0xff] %v3072_v18 }
 0x428   :  { %v3076_v33 = vpop.f32.mrb[18].mxu0 }
 0x429   :  { %v3077_v34 = vadd.f32 %v3171_v16, %v3076_v33  ;;  %v3078_v35 = vpop.f32.mrb[19].mxu0 }
 0x42b   :  { %3081 = vst [vmem:[#allocation10 + $0x8] sm:$0xff] %v3077_v34 }
 0x42c   :  { %3623 = shalt.err (!%p3620_p8)
}
 0x42d   :  { %s3624_s19 = scalar_lea.hbm %s4082_s7, 256 }
 0x42e   :  { %p3625_p9 = scmp.ne.s32.totalorder %s4082_s7, %s3624_s19  ;;  %p3628_p10 = scmp.lt.u32.totalorder %s3624_s19, %s4082_s7 }
 0x430   :  { %p3630_p11 = pnand %p3628_p10, %p3625_p9 }
 0x432   :  { %3633 = shalt.err (!%p3630_p11)
}
 0x433   :  { %3093 = dma.vmem_to_hbm [thread:$0]  %s3088_s27, 256, %s4082_s7, [#allocation4], %s3644_s13, %s3644_s13, %s3645_s14  }
 0x434   :  { %3640 = dma.done.wait [#allocation4], 256  }
 0x435   :  { %3641 = vsyncadd [#allocation4], 4294967040 }
 0x436   :  { %3097 = vsyncpa [#allocation3], 1 }
 0x437   :  { %3098 = vsyncpa [#allocation6], 1 }
 0x438   :  { %3099 = vsyncpa [#allocation9], 1 }
 0x439   :  { %3100 = vsyncpa [#allocation4], 1 }

</bundles_post_ra>
